<compile_context>
chip_gen: v7x
topology: tpu7x:2x2x1
jax: 0.10.0
libtpu: 0.0.40
codegen_flags: <defaults>
</compile_context>

<pallas_src>
import functools

import jax
import jax.numpy as jnp
from jax.experimental import pallas as pl
from jax.experimental.pallas import tpu as pltpu

# Fixed architecture from the PyTorch module.
H1, H2, H3 = 256, 512, 1024
OUT_PAD = 128                              # lane-dense padded output width
_B1_OFF = 0
_B2_OFF = H1                               # 256   (128-aligned)
_B3_OFF = H1 + H2                          # 768   (128-aligned)
_B4_OFF = H1 + H2 + H3                     # 1792  (128-aligned)
BIAS_TOTAL = H1 + H2 + H3 + OUT_PAD        # 1920


# ---------------------------------------------------------------------------
# Pallas kernel: fused 4-layer MLP (Linear+ReLU x3, Linear+Tanh).
# One grid step processes a (tm, 128) batch tile; weights stay VMEM-resident.
# ---------------------------------------------------------------------------
def _generator_kernel(x_ref, w1_ref, w2_ref, w3_ref, w4_ref, bias_ref, out_ref):
    b1 = bias_ref[:, _B1_OFF:_B1_OFF + H1]
    b2 = bias_ref[:, _B2_OFF:_B2_OFF + H2]
    b3 = bias_ref[:, _B3_OFF:_B3_OFF + H3]
    b4 = bias_ref[:, _B4_OFF:_B4_OFF + OUT_PAD]

    # Layer 1: x already holds concat(noise, cond) padded to 128 lanes (bf16).
    h = jnp.dot(x_ref[...], w1_ref[...], preferred_element_type=jnp.float32)
    h = jnp.maximum(h + b1, 0.0).astype(jnp.bfloat16)

    # Layer 2
    h = jnp.dot(h, w2_ref[...], preferred_element_type=jnp.float32)
    h = jnp.maximum(h + b2, 0.0).astype(jnp.bfloat16)

    # Layer 3
    h = jnp.dot(h, w3_ref[...], preferred_element_type=jnp.float32)
    h = jnp.maximum(h + b3, 0.0).astype(jnp.bfloat16)

    # Layer 4 (output padded to 128 lanes; padded cols carry zero weights)
    h = jnp.dot(h, w4_ref[...], preferred_element_type=jnp.float32)
    out_ref[...] = jnp.tanh(h + b4).astype(jnp.bfloat16)


# ---------------------------------------------------------------------------
# Tiling helpers (trace-time only).
# ---------------------------------------------------------------------------
@functools.lru_cache(maxsize=1)
def _tensorcores_per_chip():
    # v7x is the only targeted generation with 2 TensorCores per chip.
    try:
        kind = jax.devices()[0].device_kind.lower()
    except Exception:
        return 1
    return 2 if ("v7" in kind or "7x" in kind) else 1


def _choose_tiling(b):
    """Pick (tm, num_blocks, padded_batch) for batch size b."""
    b8 = max(8, ((b + 7) // 8) * 8)
    tm = 8
    for cand in (512, 256, 128, 64, 32, 16, 8):
        if cand > b8:
            continue
        b_pad = ((b + cand - 1) // cand) * cand
        # Keep padded (wasted) rows below 25% of the rows actually processed.
        if 4 * (b_pad - b) <= b_pad:
            tm = cand
            break
    b_pad = ((b + tm - 1) // tm) * tm
    # On v7x, make sure the grid has >=2 steps so both TensorCores get work.
    if _tensorcores_per_chip() >= 2 and b_pad // tm < 2 and b_pad >= 16:
        tm = max(8, tm // 2)
        b_pad = ((b + tm - 1) // tm) * tm
    return tm, b_pad // tm, b_pad


# ---------------------------------------------------------------------------
# Wrapper
# ---------------------------------------------------------------------------
@functools.partial(jax.jit, static_argnames=("out_dim",))
def generator_forward(noise, conditions, packed, out_dim):
    """noise: (B, latent_dim), conditions: (B, condition_dim) -> (B, out_dim)."""
    w1, w2, w3, w4, bias = packed
    b = noise.shape[0]
    d_in_pad = w1.shape[0]

    # Concatenate once, cast to bf16, pad lanes to the packed W1 row count.
    x = jnp.concatenate([noise, conditions], axis=-1).astype(jnp.bfloat16)
    d_in = x.shape[1]
    if d_in_pad != d_in:
        x = jnp.pad(x, ((0, 0), (0, d_in_pad - d_in)))

    tm, nb, b_pad = _choose_tiling(b)
    if b_pad != b:
        x = jnp.pad(x, ((0, b_pad - b), (0, 0)))

    flops = 2 * b_pad * (d_in_pad * H1 + H1 * H2 + H2 * H3 + H3 * OUT_PAD)
    weight_bytes = 2 * (d_in_pad * H1 + H1 * H2 + H2 * H3 + H3 * OUT_PAD)  # bf16
    bytes_accessed = (weight_bytes + 4 * BIAS_TOTAL
                      + 2 * b_pad * d_in_pad       # bf16 input
                      + 2 * b_pad * OUT_PAD)       # bf16 output
    cost = pl.CostEstimate(flops=flops,
                           transcendentals=b_pad * OUT_PAD,
                           bytes_accessed=bytes_accessed)

    # Weights/bias stay resident across the (parallel) batch grid.
    resident = lambda arr: pl.BlockSpec(arr.shape, lambda i: (0,) * arr.ndim)

    out = pl.pallas_call(
        _generator_kernel,
        out_shape=jax.ShapeDtypeStruct((b_pad, OUT_PAD), jnp.bfloat16),
        grid=(nb,),
        in_specs=[pl.BlockSpec((tm, d_in_pad), lambda i: (i, 0)),
                  resident(w1), resident(w2), resident(w3), resident(w4),
                  resident(bias)],
        out_specs=pl.BlockSpec((tm, OUT_PAD), lambda i: (i, 0)),
        compiler_params=pltpu.CompilerParams(
            dimension_semantics=("parallel",),
            vmem_limit_bytes=32 << 20),
        cost_estimate=cost,
    )(x, w1, w2, w3, w4, bias)

    return out[:b, :out_dim].astype(jnp.float32)


# ---------------------------------------------------------------------------
# Parameter init (PyTorch nn.Linear-style), stored transposed (in, out).
# init_params returns raw f32 params (used by the reference); pack_params
# builds the bf16 / padded layout consumed by the kernel (done once).
# ---------------------------------------------------------------------------
def init_params(key, latent_dim, condition_dim, input_dim):
    dims = [latent_dim + condition_dim, H1, H2, H3, input_dim]
    raw = []
    for i in range(4):
        fan_in, fan_out = dims[i], dims[i + 1]
        key, kw, kb = jax.random.split(key, 3)
        bound = 1.0 / float(fan_in) ** 0.5
        w = jax.random.uniform(kw, (fan_in, fan_out), jnp.float32, -bound, bound)
        bv = jax.random.uniform(kb, (fan_out,), jnp.float32, -bound, bound)
        raw.append((w, bv))
    return raw


def pack_params(raw, latent_dim, condition_dim, input_dim):
    (w1, b1), (w2, b2), (w3, b3), (w4, b4) = raw
    d_in = latent_dim + condition_dim
    d_in_pad = ((d_in + 127) // 128) * 128                      # lane-dense K for layer 1
    w1p = (jnp.zeros((d_in_pad, H1), jnp.float32)
           .at[:d_in].set(w1)).astype(jnp.bfloat16)              # (128, 256)
    w2b = w2.astype(jnp.bfloat16)                                # (256, 512)
    w3b = w3.astype(jnp.bfloat16)                                # (512, 1024)
    w4p = (jnp.zeros((H3, OUT_PAD), jnp.float32)
           .at[:, :input_dim].set(w4)).astype(jnp.bfloat16)      # (1024, 128)
    b4p = jnp.zeros((OUT_PAD,), jnp.float32).at[:input_dim].set(b4)
    bias = jnp.concatenate([b1, b2, b3, b4p]).reshape(1, BIAS_TOTAL)
    return (w1p, w2b, w3b, w4p, bias.astype(jnp.float32))


# Pure-JAX f32 reference for correctness check.
def reference_forward(noise, conditions, raw):
    x = jnp.concatenate([noise, conditions], axis=-1).astype(jnp.float32)
    (w1, b1), (w2, b2), (w3, b3), (w4, b4) = raw
    h = jnp.maximum(x @ w1 + b1, 0.0)
    h = jnp.maximum(h @ w2 + b2, 0.0)
    h = jnp.maximum(h @ w3 + b3, 0.0)
    return jnp.tanh(h @ w4 + b4)


if __name__ == "__main__":
    LATENT_DIM = 32
    CONDITION_DIM = 8
    INPUT_DIM = 12      # "12维数据样本X"
    BATCH = 2

    key = jax.random.PRNGKey(0)
    k_p, k_n, k_c = jax.random.split(key, 3)

    raw = init_params(k_p, LATENT_DIM, CONDITION_DIM, INPUT_DIM)
    packed = pack_params(raw, LATENT_DIM, CONDITION_DIM, INPUT_DIM)

    noise = jax.random.normal(k_n, (BATCH, LATENT_DIM), jnp.float32)
    conditions = jax.random.normal(k_c, (BATCH, CONDITION_DIM), jnp.float32)

    out = generator_forward(noise, conditions, packed, out_dim=INPUT_DIM)
    out = jax.block_until_ready(out)

    ref = reference_forward(noise, conditions, raw)
    assert out.shape == (BATCH, INPUT_DIM), out.shape
    max_err = float(jnp.max(jnp.abs(out - ref)))
    # bf16 weights + bf16 activations + bf16 output vs. f32 reference.
    assert max_err < 5e-2, max_err

    print("KERNEL_OK")
</pallas_src>

<mosaic_0001>
module attributes {stable_mosaic.version = 11 : i64} {
  func.func @_generator_kernel(%arg0: i32, %arg1: memref<8x128xbf16, #tpu.memory_space<vmem>>, %arg2: memref<128x256xbf16, #tpu.memory_space<vmem>>, %arg3: memref<256x512xbf16, #tpu.memory_space<vmem>>, %arg4: memref<512x1024xbf16, #tpu.memory_space<vmem>>, %arg5: memref<1024x128xbf16, #tpu.memory_space<vmem>>, %arg6: memref<1x1920xf32, #tpu.memory_space<vmem>>, %arg7: memref<8x128xbf16, #tpu.memory_space<vmem>>) attributes {dimension_semantics = [#tpu.dimension_semantics<parallel>], iteration_bounds = array<i64: 1>, scalar_prefetch = 0 : i64, scratch_operands = 0 : i64, tpu.core_type = #tpu.core_type<tc>, window_params = [{transform_indices = @transform_0, window_bounds = array<i64: 8, 128>}, {pipeline_mode = #tpu.pipeline_mode<synchronous>, transform_indices = @transform_1, window_bounds = array<i64: 128, 256>}, {pipeline_mode = #tpu.pipeline_mode<synchronous>, transform_indices = @transform_2, window_bounds = array<i64: 256, 512>}, {pipeline_mode = #tpu.pipeline_mode<synchronous>, transform_indices = @transform_3, window_bounds = array<i64: 512, 1024>}, {pipeline_mode = #tpu.pipeline_mode<synchronous>, transform_indices = @transform_4, window_bounds = array<i64: 1024, 128>}, {pipeline_mode = #tpu.pipeline_mode<synchronous>, transform_indices = @transform_5, window_bounds = array<i64: 1, 1920>}, {transform_indices = @transform_6, window_bounds = array<i64: 8, 128>}]} {
    %c0 = arith.constant 0 : index
    %c0_0 = arith.constant 0 : index
    %0 = vector.load %arg6[%c0, %c0_0] : memref<1x1920xf32, #tpu.memory_space<vmem>>, vector<1x256xf32>
    %c0_1 = arith.constant 0 : index
    %c256 = arith.constant 256 : index
    %1 = vector.load %arg6[%c0_1, %c256] : memref<1x1920xf32, #tpu.memory_space<vmem>>, vector<1x512xf32>
    %c0_2 = arith.constant 0 : index
    %c768 = arith.constant 768 : index
    %2 = vector.load %arg6[%c0_2, %c768] : memref<1x1920xf32, #tpu.memory_space<vmem>>, vector<1x1024xf32>
    %c0_3 = arith.constant 0 : index
    %c1792 = arith.constant 1792 : index
    %3 = vector.load %arg6[%c0_3, %c1792] : memref<1x1920xf32, #tpu.memory_space<vmem>>, vector<1x128xf32>
    %c0_4 = arith.constant 0 : index
    %c0_5 = arith.constant 0 : index
    %4 = vector.load %arg1[%c0_4, %c0_5] : memref<8x128xbf16, #tpu.memory_space<vmem>>, vector<8x128xbf16>
    %c0_6 = arith.constant 0 : index
    %c0_7 = arith.constant 0 : index
    %5 = vector.load %arg2[%c0_6, %c0_7] : memref<128x256xbf16, #tpu.memory_space<vmem>>, vector<128x256xbf16>
    %cst = arith.constant dense<0.000000e+00> : vector<8x256xf32>
    %6 = tpu.matmul %4, %5, %cst {dimension_numbers = #tpu.dot_dimension_numbers<[1], [0], [0], [1], [0, 0, 1, 1], [], []>} : vector<8x128xbf16>, vector<128x256xbf16>, vector<8x256xf32> -> vector<8x256xf32>
    %7 = vector.broadcast %0 : vector<1x256xf32> to vector<8x256xf32>
    %8 = arith.addf %6, %7 : vector<8x256xf32>
    %cst_8 = arith.constant 0.000000e+00 : f32
    %9 = vector.broadcast %cst_8 : f32 to vector<8x256xf32>
    %10 = arith.maximumf %8, %9 : vector<8x256xf32>
    %11 = arith.truncf %10 : vector<8x256xf32> to vector<8x256xbf16>
    %c0_9 = arith.constant 0 : index
    %c0_10 = arith.constant 0 : index
    %12 = vector.load %arg3[%c0_9, %c0_10] : memref<256x512xbf16, #tpu.memory_space<vmem>>, vector<256x512xbf16>
    %cst_11 = arith.constant dense<0.000000e+00> : vector<8x512xf32>
    %13 = tpu.matmul %11, %12, %cst_11 {dimension_numbers = #tpu.dot_dimension_numbers<[1], [0], [0], [1], [0, 0, 1, 1], [], []>} : vector<8x256xbf16>, vector<256x512xbf16>, vector<8x512xf32> -> vector<8x512xf32>
    %14 = vector.broadcast %1 : vector<1x512xf32> to vector<8x512xf32>
    %15 = arith.addf %13, %14 : vector<8x512xf32>
    %cst_12 = arith.constant 0.000000e+00 : f32
    %16 = vector.broadcast %cst_12 : f32 to vector<8x512xf32>
    %17 = arith.maximumf %15, %16 : vector<8x512xf32>
    %18 = arith.truncf %17 : vector<8x512xf32> to vector<8x512xbf16>
    %c0_13 = arith.constant 0 : index
    %c0_14 = arith.constant 0 : index
    %19 = vector.load %arg4[%c0_13, %c0_14] : memref<512x1024xbf16, #tpu.memory_space<vmem>>, vector<512x1024xbf16>
    %cst_15 = arith.constant dense<0.000000e+00> : vector<8x1024xf32>
    %20 = tpu.matmul %18, %19, %cst_15 {dimension_numbers = #tpu.dot_dimension_numbers<[1], [0], [0], [1], [0, 0, 1, 1], [], []>} : vector<8x512xbf16>, vector<512x1024xbf16>, vector<8x1024xf32> -> vector<8x1024xf32>
    %21 = vector.broadcast %2 : vector<1x1024xf32> to vector<8x1024xf32>
    %22 = arith.addf %20, %21 : vector<8x1024xf32>
    %cst_16 = arith.constant 0.000000e+00 : f32
    %23 = vector.broadcast %cst_16 : f32 to vector<8x1024xf32>
    %24 = arith.maximumf %22, %23 : vector<8x1024xf32>
    %25 = arith.truncf %24 : vector<8x1024xf32> to vector<8x1024xbf16>
    %c0_17 = arith.constant 0 : index
    %c0_18 = arith.constant 0 : index
    %26 = vector.load %arg5[%c0_17, %c0_18] : memref<1024x128xbf16, #tpu.memory_space<vmem>>, vector<1024x128xbf16>
    %cst_19 = arith.constant dense<0.000000e+00> : vector<8x128xf32>
    %27 = tpu.matmul %25, %26, %cst_19 {dimension_numbers = #tpu.dot_dimension_numbers<[1], [0], [0], [1], [0, 0, 1, 1], [], []>} : vector<8x1024xbf16>, vector<1024x128xbf16>, vector<8x128xf32> -> vector<8x128xf32>
    %28 = vector.broadcast %3 : vector<1x128xf32> to vector<8x128xf32>
    %29 = arith.addf %27, %28 : vector<8x128xf32>
    %30 = math.tanh %29 : vector<8x128xf32>
    %31 = arith.truncf %30 : vector<8x128xf32> to vector<8x128xbf16>
    %c0_20 = arith.constant 0 : index
    %c0_21 = arith.constant 0 : index
    %32 = vector.load %arg7[%c0_20, %c0_21] : memref<8x128xbf16, #tpu.memory_space<vmem>>, vector<8x128xbf16>
    tpu.vector_store %arg7[%c0_20, %c0_21], %31 {strides = array<i32>} : memref<8x128xbf16, #tpu.memory_space<vmem>>, vector<8x128xbf16>,
    return
  }
  func.func @transform_0(%arg0: i32) -> (i32, i32) {
    %c0_i32 = arith.constant 0 : i32
    %c0_i32_0 = arith.constant 0 : i32
    return %arg0, %c0_i32 : i32, i32
  }
  func.func @transform_1(%arg0: i32) -> (i32, i32) {
    %c0_i32 = arith.constant 0 : i32
    %c0_i32_0 = arith.constant 0 : i32
    %c0_i32_1 = arith.constant 0 : i32
    return %c0_i32, %c0_i32_0 : i32, i32
  }
  func.func @transform_2(%arg0: i32) -> (i32, i32) {
    %c0_i32 = arith.constant 0 : i32
    %c0_i32_0 = arith.constant 0 : i32
    %c0_i32_1 = arith.constant 0 : i32
    return %c0_i32, %c0_i32_0 : i32, i32
  }
  func.func @transform_3(%arg0: i32) -> (i32, i32) {
    %c0_i32 = arith.constant 0 : i32
    %c0_i32_0 = arith.constant 0 : i32
    %c0_i32_1 = arith.constant 0 : i32
    return %c0_i32, %c0_i32_0 : i32, i32
  }
  func.func @transform_4(%arg0: i32) -> (i32, i32) {
    %c0_i32 = arith.constant 0 : i32
    %c0_i32_0 = arith.constant 0 : i32
    %c0_i32_1 = arith.constant 0 : i32
    return %c0_i32, %c0_i32_0 : i32, i32
  }
  func.func @transform_5(%arg0: i32) -> (i32, i32) {
    %c0_i32 = arith.constant 0 : i32
    %c0_i32_0 = arith.constant 0 : i32
    %c0_i32_1 = arith.constant 0 : i32
    return %c0_i32, %c0_i32_0 : i32, i32
  }
  func.func @transform_6(%arg0: i32) -> (i32, i32) {
    %c0_i32 = arith.constant 0 : i32
    %c0_i32_0 = arith.constant 0 : i32
    return %arg0, %c0_i32 : i32, i32
  }
}

</mosaic_0001>

<bundles_post_ra>
// kernel: generator_forward.1
= control target key start
LH: loop header
LB: loop body
LE: loop exit
PB: predicated region body
PF: predicated region fallthrough
CT: control target
= control target key end

     0   :  { %11 = vsyncpa [#allocation3], 0  ;;  %s4331_s0 = inlined_call_operand.vmem [shape: bf16[8,128], index: 0, kind: input, shape index: {}]   ;;  %s4332_s1 = inlined_call_operand.hbm [shape: bf16[128,256], index: 1, kind: input, shape index: {}]   ;;  %s4333_s2 = inlined_call_operand.hbm [shape: bf16[256,512], index: 2, kind: input, shape index: {}]   ;;  %s4334_s3 = inlined_call_operand.hbm [shape: bf16[512,1024], index: 3, kind: input, shape index: {}]   ;;  %s4335_s4 = inlined_call_operand.hbm [shape: bf16[1024,128], index: 4, kind: input, shape index: {}]   ;;  %s4336_s5 = inlined_call_operand.vmem [shape: f32[1,1920], index: 5, kind: input, shape index: {}]   ;;  %s4337_s6 = inlined_call_operand.vmem [shape: bf16[8,128], index: 6, kind: output, shape index: {}]  }
   0x1   :  { %12 = vsyncpa [#allocation5], 0 }
   0x2   :  { %13 = vsyncpa [#allocation8], 0  ;;  %s4146_s21 = smov [#allocation4]   ;;  %s4052_s25 = scalar_lea.hbm %s4333_s2, 8192 }
   0x3   :  { %s33_s22 = sshll.u32 %s4146_s21, 4  ;;  %p4053_p0 = scmp.ne.s32.totalorder %s4333_s2, %s4052_s25  ;;  %s34_s22 = int_to_ptr.vmem [resolvable:$true] %s33_s22 }
   0x4   :  { %p4056_p1 = scmp.lt.u32.totalorder %s4052_s25, %s4333_s2 }
   0x6   :  { %p4058_p2 = pnand %p4056_p1, %p4053_p0 }
   0x8   :  { %4061 = shalt.err (!%p4058_p2)
}
   0x9   :  { %s4062_s30 = scalar_lea.vmem %s34_s22, 8192  ;;  %p4067_p4 = scmp.lt.s32.totalorder %s34_s22, %s34_s22 }
   0xa   :  { %p4063_p3 = scmp.ne.s32.totalorder %s34_s22, %s4062_s30  ;;  %p4068_p5 = scmp.lt.s32.totalorder %s4062_s30, %s4062_s30 }
   0xc   :  { %p4069_p6 = por %p4068_p5, %p4067_p4 }
   0xe   :  { %p4070_p7 = pnand %p4069_p6, %p4063_p3 }
  0x10   :  { %4073 = shalt.err (!%p4070_p7)
}
  0x11   :  { %s4147_s7 = smov 256   ;;  %s4148_s8 = smov 16  }
  0x12   :  { %39 = dma.hbm_to_vmem [thread:$0]  %s4333_s2, 8192, %s34_s22, [#allocation5], %s4147_s7, %s4147_s7, %s4148_s8  }
  0x13   :  { %s4149_s11 = smov [#allocation2]   ;;  %s4074_s15 = scalar_lea.hbm %s4332_s1, 2048 }
  0x14   :  { %s21_s12 = sshll.u32 %s4149_s11, 4  ;;  %p4075_p8 = scmp.ne.s32.totalorder %s4332_s1, %s4074_s15  ;;  %s22_s12 = int_to_ptr.vmem [resolvable:$true] %s21_s12 }
  0x15   :  { %p4078_p9 = scmp.lt.u32.totalorder %s4074_s15, %s4332_s1 }
  0x17   :  { %p4080_p10 = pnand %p4078_p9, %p4075_p8 }
  0x19   :  { %4083 = shalt.err (!%p4080_p10)
}
  0x1a   :  { %s4084_s20 = scalar_lea.vmem %s22_s12, 2048  ;;  %p4089_p12 = scmp.lt.s32.totalorder %s22_s12, %s22_s12 }
  0x1b   :  { %p4085_p11 = scmp.ne.s32.totalorder %s22_s12, %s4084_s20  ;;  %p4090_p13 = scmp.lt.s32.totalorder %s4084_s20, %s4084_s20 }
  0x1d   :  { %p4091_p0 = por %p4090_p13, %p4089_p12 }
  0x1f   :  { %p4092_p1 = pnand %p4091_p0, %p4085_p11 }
  0x21   :  { %4095 = shalt.err (!%p4092_p1)
}
  0x22   :  { %s4150_s2 = smov 128   ;;  %s4151_s21 = smov 8  }
  0x23   :  { %27 = dma.hbm_to_vmem [thread:$0]  %s4332_s1, 2048, %s22_s12, [#allocation3], %s4150_s2, %s4150_s2, %s4151_s21  }
  0x24   :  { %s4152_s24 = smov [#allocation6]   ;;  %s4096_s28 = scalar_lea.hbm %s4334_s3, 32768 }
  0x25   :  { %s45_s25 = sshll.u32 %s4152_s24, 4  ;;  %p4097_p2 = scmp.ne.s32.totalorder %s4334_s3, %s4096_s28  ;;  %s46_s25 = int_to_ptr.vmem [resolvable:$true] %s45_s25 }
  0x26   :  { %p4100_p3 = scmp.lt.u32.totalorder %s4096_s28, %s4334_s3 }
  0x28   :  { %p4102_p4 = pnand %p4100_p3, %p4097_p2 }
  0x2a   :  { %4105 = shalt.err (!%p4102_p4)
}
  0x2b   :  { %s4106_s9 = scalar_lea.vmem %s46_s25, 32768  ;;  %p4111_p6 = scmp.lt.s32.totalorder %s46_s25, %s46_s25 }
  0x2c   :  { %p4107_p5 = scmp.ne.s32.totalorder %s46_s25, %s4106_s9  ;;  %p4112_p7 = scmp.lt.s32.totalorder %s4106_s9, %s4106_s9 }
  0x2e   :  { %p4113_p8 = por %p4112_p7, %p4111_p6 }
  0x30   :  { %p4114_p9 = pnand %p4113_p8, %p4107_p5 }
  0x32   :  { %4117 = shalt.err (!%p4114_p9)
}
  0x33   :  { %s4153_s1 = smov 512   ;;  %s4154_s10 = smov 32  }
  0x34   :  { %51 = dma.hbm_to_vmem [thread:$0]  %s4334_s3, 32768, %s46_s25, [#allocation5], %s4153_s1, %s4153_s1, %s4154_s10  }
  0x35   :  { %s4155_s13 = smov [#allocation7]   ;;  %s4118_s17 = scalar_lea.hbm %s4335_s4, 8192 }
  0x36   :  { %s57_s14 = sshll.u32 %s4155_s13, 4  ;;  %p4119_p10 = scmp.ne.s32.totalorder %s4335_s4, %s4118_s17  ;;  %s58_s14 = int_to_ptr.vmem [resolvable:$true] %s57_s14 }
  0x37   :  { %p4122_p11 = scmp.lt.u32.totalorder %s4118_s17, %s4335_s4 }
  0x39   :  { %p4124_p12 = pnand %p4122_p11, %p4119_p10 }
  0x3b   :  { %4127 = shalt.err (!%p4124_p12)
}
  0x3c   :  { %s4128_s21 = scalar_lea.vmem %s58_s14, 8192  ;;  %p4133_p0 = scmp.lt.s32.totalorder %s58_s14, %s58_s14 }
  0x3d   :  { %p4129_p13 = scmp.ne.s32.totalorder %s58_s14, %s4128_s21  ;;  %p4134_p1 = scmp.lt.s32.totalorder %s4128_s21, %s4128_s21 }
  0x3f   :  { %p4135_p2 = por %p4134_p1, %p4133_p0 }
  0x41   :  { %p4136_p3 = pnand %p4135_p2, %p4129_p13 }
  0x43   :  { %4139 = shalt.err (!%p4136_p3)
}
  0x44   :  { %s4156_s3 = smov 64   ;;  %s4157_s22 = smov 4  }
  0x45   :  { %63 = dma.hbm_to_vmem [thread:$0]  %s4335_s4, 8192, %s58_s14, [#allocation8], %s4156_s3, %s4156_s3, %s4157_s22  }
  0x46   :  { %4140 = dma.done.wait [#allocation3], 2048  }
  0x47   :  { %4141 = vsyncadd [#allocation3], 4294965248 }
  0x48   :  { %4142 = dma.done.wait [#allocation5], 40960  }
  0x49   :  { %4143 = vsyncadd [#allocation5], 4294926336 }
  0x4a   :  { %4144 = dma.done.wait [#allocation8], 8192  }
  0x4b   :  { %4145 = vsyncadd [#allocation8], 4294959104  ;;  %v4158_v0 = vmov 0   ;;  %v3866_v1 = vld [vmem:[#allocation2 + $0x4] ss:$8 sps:$4 sm:$0xff]  }
  0x4c   :  { %223 = vmatprep.mubr.bf16.mxu0 %v4158_v0  ;;  %v3868_v2 = vld [vmem:[#allocation2] ss:$8 sps:$4 sm:$0xff]   ;;  %191 = vmatprep.subr.bf16.mxu0 %v3866_v1  ;;  %v3869_v3 = vld [vmem:[#allocation2 + $0x14] ss:$8 sps:$4 sm:$0xff]   ;;  %v3871_v4 = vld [vmem:[#allocation2 + $0x10] ss:$8 sps:$4 sm:$0xff]  }
  0x4d   :  { %192 = vmatpush1.bf16.msra.mxu0 %v3868_v2  ;;  %v3872_v5 = vld [vmem:[#allocation2 + $0x24] ss:$8 sps:$4 sm:$0xff]   ;;  %v3874_v6 = vld [vmem:[#allocation2 + $0x20] ss:$8 sps:$4 sm:$0xff]   ;;  %v3875_v7 = vld [vmem:[#allocation2 + $0x34] ss:$8 sps:$4 sm:$0xff]  }
  0x4e   :  { %193 = vmatprep.subr.bf16.mxu0 %v3869_v3  ;;  %v3877_v8 = vld [vmem:[#allocation2 + $0x30] ss:$8 sps:$4 sm:$0xff]   ;;  %v3890_v9 = vld [vmem:[#allocation4 + $0x4] ss:$16 sps:$4 sm:$0xff]   ;;  %v3880_v13 = vld [vmem:[#allocation2 + $0x40] ss:$8 sps:$4 sm:$0xff]  }
  0x4f   :  { %v3878_v10 = vld [vmem:[#allocation2 + $0x44] ss:$8 sps:$4 sm:$0xff]   ;;  %641 = vmatprep.subr.bf16.mxu1 %v3890_v9  ;;  %v3895_v11 = vld [vmem:[#allocation4] ss:$16 sps:$4 sm:$0xff]   ;;  %v3881_v14 = vld [vmem:[#allocation2 + $0x54] ss:$8 sps:$4 sm:$0xff]  }
  0x50   :  { %v3896_v12 = vld [vmem:[#allocation4 + $0x24] ss:$16 sps:$4 sm:$0xff]   ;;  %642 = vmatpush1.bf16.msra.mxu1 %v3895_v11  ;;  %v3901_v15 = vld [vmem:[#allocation4 + $0x20] ss:$16 sps:$4 sm:$0xff]   ;;  %v3894_v26 = vld [vmem:[#allocation4 + $0xc] ss:$16 sps:$4 sm:$0xff]  }
  0x51   :  { %194 = vmatpush1.bf16.msra.mxu0 %v3871_v4  ;;  %643 = vmatprep.subr.bf16.mxu1 %v3896_v12  ;;  %v3902_v16 = vld [vmem:[#allocation4 + $0x44] ss:$16 sps:$4 sm:$0xff]   ;;  %v3883_v17 = vld [vmem:[#allocation2 + $0x50] ss:$8 sps:$4 sm:$0xff]   ;;  %v3886_v21 = vld [vmem:[#allocation2 + $0x60] ss:$8 sps:$4 sm:$0xff]  }
  0x52   :  { %195 = vmatprep.subr.bf16.mxu0 %v3872_v5  ;;  %v3884_v18 = vld [vmem:[#allocation2 + $0x64] ss:$8 sps:$4 sm:$0xff]   ;;  %v3907_v19 = vld [vmem:[#allocation4 + $0x40] ss:$16 sps:$4 sm:$0xff]   ;;  %v3887_v22 = vld [vmem:[#allocation2 + $0x74] ss:$8 sps:$4 sm:$0xff]  }
  0x53   :  { %v3908_v20 = vld [vmem:[#allocation4 + $0x64] ss:$16 sps:$4 sm:$0xff]   ;;  %v3913_v23 = vld [vmem:[#allocation4 + $0x60] ss:$16 sps:$4 sm:$0xff]   ;;  %v3892_v30 = vld [vmem:[#allocation4 + $0x8] ss:$16 sps:$4 sm:$0xff]  }
  0x54   :  { %644 = vmatpush1.bf16.msra.mxu1 %v3901_v15  ;;  %v3914_v24 = vld [vmem:[#allocation4 + $0x84] ss:$16 sps:$4 sm:$0xff]   ;;  %v3889_v25 = vld [vmem:[#allocation2 + $0x70] ss:$8 sps:$4 sm:$0xff]   ;;  %v3900_v31 = vld [vmem:[#allocation4 + $0x2c] ss:$16 sps:$4 sm:$0xff]  }
  0x55   :  { %196 = vmatpush1.bf16.msra.mxu0 %v3874_v6  ;;  %645 = vmatprep.subr.bf16.mxu1 %v3902_v16  ;;  %v3919_v27 = vld [vmem:[#allocation4 + $0x80] ss:$16 sps:$4 sm:$0xff]   ;;  %v3920_v28 = vld [vmem:[#allocation4 + $0xa4] ss:$16 sps:$4 sm:$0xff]   ;;  %v3898_v34 = vld [vmem:[#allocation4 + $0x28] ss:$16 sps:$4 sm:$0xff]  }
  0x56   :  { %197 = vmatprep.subr.bf16.mxu0 %v3875_v7  ;;  %v83_v29 = vld [vmem:[%s4331_s0] sm:$0xf]  ;;  %v3926_v33 = vld [vmem:[#allocation4 + $0xc4] ss:$16 sps:$4 sm:$0xff]   ;;  %v3906_v35 = vld [vmem:[#allocation4 + $0x4c] ss:$16 sps:$4 sm:$0xff]  }
  0x57   :  { %v3925_v32 = vld [vmem:[#allocation4 + $0xa0] ss:$16 sps:$4 sm:$0xff]   ;;  %v3932_v37 = vld [vmem:[#allocation4 + $0xe4] ss:$16 sps:$4 sm:$0xff]   ;;  %v3904_v38 = vld [vmem:[#allocation4 + $0x48] ss:$16 sps:$4 sm:$0xff]  }
  0x58   :  { %646 = vmatpush1.bf16.msra.mxu1 %v3907_v19  ;;  %v3931_v36 = vld [vmem:[#allocation4 + $0xc0] ss:$16 sps:$4 sm:$0xff]   ;;  %v3912_v39 = vld [vmem:[#allocation4 + $0x6c] ss:$16 sps:$4 sm:$0xff]   ;;  %v3938_v41 = vld [vmem:[#allocation4 + $0x104] ss:$16 sps:$4 sm:$0xff]  }
  0x59   :  { %198 = vmatpush1.bf16.msra.mxu0 %v3877_v8  ;;  %647 = vmatprep.subr.bf16.mxu1 %v3908_v20  ;;  %v3937_v40 = vld [vmem:[#allocation4 + $0xe0] ss:$16 sps:$4 sm:$0xff]   ;;  %v3910_v42 = vld [vmem:[#allocation4 + $0x68] ss:$16 sps:$4 sm:$0xff]   ;;  %v3918_v43 = vld [vmem:[#allocation4 + $0x8c] ss:$16 sps:$4 sm:$0xff]  }
  0x5a   :  { %199 = vmatprep.subr.bf16.mxu0 %v3878_v10  ;;  %v3943_v44 = vld [vmem:[#allocation4 + $0x100] ss:$16 sps:$4 sm:$0xff]   ;;  %v3944_v45 = vld [vmem:[#allocation4 + $0x124] ss:$16 sps:$4 sm:$0xff]   ;;  %v3916_v46 = vld [vmem:[#allocation4 + $0x88] ss:$16 sps:$4 sm:$0xff]  }
  0x5b   :  { %v3949_v47 = vld [vmem:[#allocation4 + $0x120] ss:$16 sps:$4 sm:$0xff]   ;;  %v3924_v48 = vld [vmem:[#allocation4 + $0xac] ss:$16 sps:$4 sm:$0xff]   ;;  %v3950_v49 = vld [vmem:[#allocation4 + $0x144] ss:$16 sps:$4 sm:$0xff]  }
  0x5c   :  { %648 = vmatpush1.bf16.msra.mxu1 %v3913_v23  ;;  %v3922_v50 = vld [vmem:[#allocation4 + $0xa8] ss:$16 sps:$4 sm:$0xff]   ;;  %v3955_v51 = vld [vmem:[#allocation4 + $0x140] ss:$16 sps:$4 sm:$0xff]   ;;  %v3930_v52 = vld [vmem:[#allocation4 + $0xcc] ss:$16 sps:$4 sm:$0xff]  }
  0x5d   :  { %200 = vmatpush1.bf16.msra.mxu0 %v3880_v13  ;;  %649 = vmatprep.subr.bf16.mxu1 %v3914_v24  ;;  %v3956_v53 = vld [vmem:[#allocation4 + $0x164] ss:$16 sps:$4 sm:$0xff]   ;;  %v3928_v54 = vld [vmem:[#allocation4 + $0xc8] ss:$16 sps:$4 sm:$0xff]   ;;  %v3961_v55 = vld [vmem:[#allocation4 + $0x160] ss:$16 sps:$4 sm:$0xff]  }
  0x5e   :  { %201 = vmatprep.subr.bf16.mxu0 %v3881_v14  ;;  %v3936_v56 = vld [vmem:[#allocation4 + $0xec] ss:$16 sps:$4 sm:$0xff]   ;;  %v3962_v57 = vld [vmem:[#allocation4 + $0x184] ss:$16 sps:$4 sm:$0xff]   ;;  %v3934_v58 = vld [vmem:[#allocation4 + $0xe8] ss:$16 sps:$4 sm:$0xff]  }
  0x5f   :  { %v3967_v59 = vld [vmem:[#allocation4 + $0x180] ss:$16 sps:$4 sm:$0xff]   ;;  %v3942_v60 = vld [vmem:[#allocation4 + $0x10c] ss:$16 sps:$4 sm:$0xff]   ;;  %v3968_v61 = vld [vmem:[#allocation4 + $0x1a4] ss:$16 sps:$4 sm:$0xff]  }
  0x60   :  { %650 = vmatpush1.bf16.msra.mxu1 %v3919_v27  ;;  %v3940_v62 = vld [vmem:[#allocation4 + $0x108] ss:$16 sps:$4 sm:$0xff]   ;;  %v3973_v63 = vld [vmem:[#allocation4 + $0x1a0] ss:$16 sps:$4 sm:$0xff]   ;;  %v3948_v0 = vld [vmem:[#allocation4 + $0x12c] ss:$16 sps:$4 sm:$0xff]  }
  0x61   :  { %202 = vmatpush1.bf16.msra.mxu0 %v3883_v17  ;;  %651 = vmatprep.subr.bf16.mxu1 %v3920_v28  ;;  %v3946_v1 = vld [vmem:[#allocation4 + $0x128] ss:$16 sps:$4 sm:$0xff]   ;;  %v3954_v2 = vld [vmem:[#allocation4 + $0x14c] ss:$16 sps:$4 sm:$0xff]   ;;  %v3974_v10 = vld [vmem:[#allocation4 + $0x1c4] ss:$16 sps:$4 sm:$0xff]  }
  0x62   :  { %203 = vmatprep.subr.bf16.mxu0 %v3884_v18  ;;  %v3952_v3 = vld [vmem:[#allocation4 + $0x148] ss:$16 sps:$4 sm:$0xff]   ;;  %v3960_v4 = vld [vmem:[#allocation4 + $0x16c] ss:$16 sps:$4 sm:$0xff]   ;;  %v3979_v13 = vld [vmem:[#allocation4 + $0x1c0] ss:$16 sps:$4 sm:$0xff]  }
  0x63   :  { %v3958_v5 = vld [vmem:[#allocation4 + $0x168] ss:$16 sps:$4 sm:$0xff]   ;;  %v3966_v6 = vld [vmem:[#allocation4 + $0x18c] ss:$16 sps:$4 sm:$0xff]   ;;  %v3980_v14 = vld [vmem:[#allocation4 + $0x1e4] ss:$16 sps:$4 sm:$0xff]  }
  0x64   :  { %652 = vmatpush1.bf16.msra.mxu1 %v3925_v32  ;;  %v3964_v7 = vld [vmem:[#allocation4 + $0x188] ss:$16 sps:$4 sm:$0xff]   ;;  %v3972_v8 = vld [vmem:[#allocation4 + $0x1ac] ss:$16 sps:$4 sm:$0xff]   ;;  %v3985_v17 = vld [vmem:[#allocation4 + $0x1e0] ss:$16 sps:$4 sm:$0xff]  }
  0x65   :  { %204 = vmatpush1.bf16.msra.mxu0 %v3886_v21  ;;  %653 = vmatprep.subr.bf16.mxu1 %v3926_v33  ;;  %v3970_v9 = vld [vmem:[#allocation4 + $0x1a8] ss:$16 sps:$4 sm:$0xff]   ;;  %v3978_v11 = vld [vmem:[#allocation4 + $0x1cc] ss:$16 sps:$4 sm:$0xff]   ;;  %v731_v18 = vld [vmem:[#allocation6] sm:$0xff] }
  0x66   :  { %205 = vmatprep.subr.bf16.mxu0 %v3887_v22  ;;  %v3976_v12 = vld [vmem:[#allocation4 + $0x1c8] ss:$16 sps:$4 sm:$0xff]   ;;  %v3984_v15 = vld [vmem:[#allocation4 + $0x1ec] ss:$16 sps:$4 sm:$0xff]   ;;  %v735_v19 = vld [vmem:[#allocation6 + $0x20] sm:$0xff] }
  0x67   :  { %v3982_v16 = vld [vmem:[#allocation4 + $0x1e8] ss:$16 sps:$4 sm:$0xff]   ;;  %v3420_v21 = vcombine.low %v731_v18, %v735_v19  ;;  %v3421_v22 = vcombine.high %v731_v18, %v735_v19  ;;  %v783_v18 = vld [vmem:[#allocation6 + $0x1a0] sm:$0xff] }
  0x68   :  { %654 = vmatpush1.bf16.msra.mxu1 %v3931_v36  ;;  %v732_v20 = vld [vmem:[#allocation6 + $0x8] sm:$0xff] }
  0x69   :  { %206 = vmatpush1.bf16.msra.mxu0 %v3889_v25  ;;  %655 = vmatprep.subr.bf16.mxu1 %v3932_v37  ;;  %v736_v23 = vld [vmem:[#allocation6 + $0x28] sm:$0xff] }
  0x6a   :  { %682 = vmatprep.subr.bf16.mxu0 %v3894_v26  ;;  %v3422_v24 = vcombine.low %v732_v20, %v736_v23  ;;  %v3423_v25 = vcombine.high %v732_v20, %v736_v23  ;;  %v101_v26 = vlaneseq  ;;  %v780_v19 = vld [vmem:[#allocation6 + $0x188] sm:$0xff] }
  0x6b   :  { %v784_v20 = vld [vmem:[#allocation6 + $0x1a8] sm:$0xff] }
  0x6c   :  { %224 = vmatmul.mubr.bf16.vlgmr.msra.gmra.mrb[0].mxu0 %v83_v29  ;;  %656 = vmatpush1.bf16.msra.mxu1 %v3937_v40  ;;  %v4245_v27 = vshrl.u32 %v101_v26, 7  ;;  %v79_v29 = vld [vmem:[%s4336_s5] sm:$0x3]  ;;  %v739_v40 = vld [vmem:[#allocation6 + $0x40] sm:$0xff] }
  0x6d   :  { %683 = vmatpush1.bf16.msra.mxu0 %v3892_v30  ;;  %657 = vmatprep.subr.bf16.mxu1 %v3938_v41  ;;  %v791_v26 = vld [vmem:[#allocation6 + $0x1e0] sm:$0xff] }
  0x6e   :  { %684 = vmatprep.subr.bf16.mxu0 %v3900_v31  ;;  %v4248_v28 = vsub.s32 0, %v4245_v27  ;;  %v4254_v30 = vsub.s32 1, %v4245_v27 }
  0x70   :  { %658 = vmatpush1.bf16.msra.mxu1 %v3943_v44  ;;  %v104_v31 = vrot.slane %v79_v29, %v4248_v28  ;;  %v108_v32 = vrot.slane %v79_v29, %v4254_v30  ;;  %v744_v44 = vld [vmem:[#allocation6 + $0x68] sm:$0xff] }
  0x71   :  { %685 = vmatpush1.bf16.msra.mxu0 %v3898_v34  ;;  %659 = vmatprep.subr.bf16.mxu1 %v3944_v45  ;;  %v788_v29 = vld [vmem:[#allocation6 + $0x1c8] sm:$0xff] }
  0x72   :  { %686 = vmatprep.subr.bf16.mxu0 %v3906_v35 }
  0x74   :  { %660 = vmatpush1.bf16.msra.mxu1 %v3949_v47 }
  0x75   :  { %687 = vmatpush1.bf16.msra.mxu0 %v3904_v38  ;;  %661 = vmatprep.subr.bf16.mxu1 %v3950_v49  ;;  %v747_v49 = vld [vmem:[#allocation6 + $0x80] sm:$0xff] }
  0x76   :  { %688 = vmatprep.subr.bf16.mxu0 %v3912_v39 }
  0x78   :  { %662 = vmatpush1.bf16.msra.mxu1 %v3955_v51  ;;  %v748_v51 = vld [vmem:[#allocation6 + $0x88] sm:$0xff] }
  0x79   :  { %689 = vmatpush1.bf16.msra.mxu0 %v3910_v42  ;;  %663 = vmatprep.subr.bf16.mxu1 %v3956_v53  ;;  %v743_v42 = vld [vmem:[#allocation6 + $0x60] sm:$0xff] }
  0x7a   :  { %690 = vmatprep.subr.bf16.mxu0 %v3918_v43  ;;  %v740_v43 = vld [vmem:[#allocation6 + $0x48] sm:$0xff]  ;;  %v3429_v47 = vcombine.high %v739_v40, %v743_v42  ;;  %v3428_v53 = vcombine.low %v739_v40, %v743_v42 }
  0x7c   :  { %664 = vmatpush1.bf16.msra.mxu1 %v3961_v55 }
  0x7d   :  { %691 = vmatpush1.bf16.msra.mxu0 %v3916_v46  ;;  %665 = vmatprep.subr.bf16.mxu1 %v3962_v57  ;;  %v755_v57 = vld [vmem:[#allocation6 + $0xc0] sm:$0xff] }
  0x7e   :  { %692 = vmatprep.subr.bf16.mxu0 %v3924_v48  ;;  %v3431_v48 = vcombine.high %v740_v43, %v744_v44 }
  0x80   :  { %666 = vmatpush1.bf16.msra.mxu1 %v3967_v59  ;;  %v756_v59 = vld [vmem:[#allocation6 + $0xc8] sm:$0xff] }
  0x81   :  { %693 = vmatpush1.bf16.msra.mxu0 %v3922_v50  ;;  %667 = vmatprep.subr.bf16.mxu1 %v3968_v61  ;;  %v751_v50 = vld [vmem:[#allocation6 + $0xa0] sm:$0xff] }
  0x82   :  { %694 = vmatprep.subr.bf16.mxu0 %v3930_v52  ;;  %v752_v52 = vld [vmem:[#allocation6 + $0xa8] sm:$0xff]  ;;  %v3437_v55 = vcombine.high %v747_v49, %v751_v50  ;;  %v3436_v61 = vcombine.low %v747_v49, %v751_v50 }
  0x84   :  { %668 = vmatpush1.bf16.msra.mxu1 %v3973_v63 }
  0x85   :  { %695 = vmatpush1.bf16.msra.mxu0 %v3928_v54  ;;  %669 = vmatprep.subr.bf16.mxu1 %v3974_v10  ;;  %v3430_v54 = vcombine.low %v740_v43, %v744_v44  ;;  %v775_v10 = vld [vmem:[#allocation6 + $0x160] sm:$0xff] }
  0x86   :  { %696 = vmatprep.subr.bf16.mxu0 %v3936_v56  ;;  %v3439_v56 = vcombine.high %v748_v51, %v752_v52  ;;  %v803_v44 = vld [vmem:[#allocation6 + $0x240] sm:$0xff] }
  0x88   :  { %670 = vmatpush1.bf16.msra.mxu1 %v3979_v13 }
  0x89   :  { %697 = vmatpush1.bf16.msra.mxu0 %v3934_v58  ;;  %671 = vmatprep.subr.bf16.mxu1 %v3980_v14  ;;  %v759_v58 = vld [vmem:[#allocation6 + $0xe0] sm:$0xff] }
  0x8a   :  { %698 = vmatprep.subr.bf16.mxu0 %v3942_v60  ;;  %v760_v60 = vld [vmem:[#allocation6 + $0xe8] sm:$0xff]  ;;  %v3445_v63 = vcombine.high %v755_v57, %v759_v58 }
  0x8c   :  { %672 = vmatpush1.bf16.msra.mxu1 %v3985_v17  ;;  %v779_v17 = vld [vmem:[#allocation6 + $0x180] sm:$0xff] }
  0x8d   :  { %699 = vmatpush1.bf16.msra.mxu0 %v3940_v62  ;;  %2308 = vmatprep.subr.bf16.mxu1 %v3421_v22  ;;  %v3438_v62 = vcombine.low %v748_v51, %v752_v52  ;;  %v3469_v23 = vcombine.high %v779_v17, %v783_v18  ;;  %v811_v52 = vld [vmem:[#allocation6 + $0x280] sm:$0xff] }
  0x8e   :  { %700 = vmatprep.subr.bf16.mxu0 %v3948_v0  ;;  %v3447_v0 = vcombine.high %v756_v59, %v760_v60 }
  0x91   :  { %701 = vmatpush1.bf16.msra.mxu0 %v3946_v1  ;;  %v763_v1 = vld [vmem:[#allocation6 + $0x100] sm:$0xff] }
  0x92   :  { %702 = vmatprep.subr.bf16.mxu0 %v3954_v2  ;;  %v767_v2 = vld [vmem:[#allocation6 + $0x120] sm:$0xff] }
  0x93   :  { %v3452_v13 = vcombine.low %v763_v1, %v767_v2 }
  0x95   :  { %703 = vmatpush1.bf16.msra.mxu0 %v3952_v3  ;;  %v764_v3 = vld [vmem:[#allocation6 + $0x108] sm:$0xff] }
  0x96   :  { %704 = vmatprep.subr.bf16.mxu0 %v3960_v4  ;;  %v768_v4 = vld [vmem:[#allocation6 + $0x128] sm:$0xff] }
  0x97   :  { %v3454_v14 = vcombine.low %v764_v3, %v768_v4 }
  0x99   :  { %705 = vmatpush1.bf16.msra.mxu0 %v3958_v5  ;;  %v3444_v5 = vcombine.low %v755_v57, %v759_v58 }
  0x9a   :  { %706 = vmatprep.subr.bf16.mxu0 %v3966_v6  ;;  %v3446_v6 = vcombine.low %v756_v59, %v760_v60  ;;  %v819_v60 = vld [vmem:[#allocation6 + $0x2c0] sm:$0xff] }
  0x9d   :  { %707 = vmatpush1.bf16.msra.mxu0 %v3964_v7  ;;  %v3453_v7 = vcombine.high %v763_v1, %v767_v2 }
  0x9e   :  { %708 = vmatprep.subr.bf16.mxu0 %v3972_v8  ;;  %v3455_v8 = vcombine.high %v764_v3, %v768_v4  ;;  %v827_v4 = vld [vmem:[#allocation6 + $0x300] sm:$0xff] }
  0xa1   :  { %709 = vmatpush1.bf16.msra.mxu0 %v3970_v9  ;;  %v771_v9 = vld [vmem:[#allocation6 + $0x140] sm:$0xff] }
  0xa2   :  { %710 = vmatprep.subr.bf16.mxu0 %v3978_v11  ;;  %v772_v11 = vld [vmem:[#allocation6 + $0x148] sm:$0xff] }
  0xa5   :  { %711 = vmatpush1.bf16.msra.mxu0 %v3976_v12  ;;  %v776_v12 = vld [vmem:[#allocation6 + $0x168] sm:$0xff] }
  0xa6   :  { %712 = vmatprep.subr.bf16.mxu0 %v3984_v15  ;;  %v3461_v15 = vcombine.high %v771_v9, %v775_v10  ;;  %v3462_v22 = vcombine.low %v772_v11, %v776_v12 }
  0xa9   :  { %713 = vmatpush1.bf16.msra.mxu0 %v3982_v16  ;;  %v3463_v16 = vcombine.high %v772_v11, %v776_v12  ;;  %v835_v12 = vld [vmem:[#allocation6 + $0x340] sm:$0xff] }
  0xaa   :  { %2390 = vmatprep.subr.bf16.mxu0 %v3423_v25  ;;  %v787_v25 = vld [vmem:[#allocation6 + $0x1c0] sm:$0xff] }
  0xab   :  { %v3476_v40 = vcombine.low %v787_v25, %v791_v26 }
 0x13f   :  { %v225_v33 = vpop.f32.mrb[0].mxu0 }
 0x140   :  { %v226_v34 = vadd.f32 %v225_v33, %v104_v31  ;;  %v227_v35 = vpop.f32.mrb[1].mxu0  ;;  %v792_v31 = vld [vmem:[#allocation6 + $0x1e8] sm:$0xff]  ;;  %v3470_v33 = vcombine.low %v780_v19, %v784_v20 }
 0x141   :  { %v228_v36 = vadd.f32 %v227_v35, %v108_v32  ;;  %v229_v37 = vpop.f32.mrb[2].mxu0  ;;  %v3468_v32 = vcombine.low %v779_v17, %v783_v18  ;;  %v3479_v35 = vcombine.high %v788_v29, %v792_v31 }
 0x142   :  { %v232_v38 = vmax.f32 %v226_v34, 0.0  ;;  %v230_v39 = vpop.f32.mrb[3].mxu0  ;;  %v3477_v34 = vcombine.high %v787_v25, %v791_v26  ;;  %v799_v37 = vld [vmem:[#allocation6 + $0x220] sm:$0xff]  ;;  %v848_v26 = vld [vmem:[#allocation6 + $0x3a8] sm:$0xff] }
 0x143   :  { %v233_v41 = vmax.f32 %v228_v36, 0.0  ;;  %v795_v36 = vld [vmem:[#allocation6 + $0x200] sm:$0xff]  ;;  %v800_v39 = vld [vmem:[#allocation6 + $0x228] sm:$0xff] }
 0x144   :  { %v234_v46 = vpack.c.bf16 %v232_v38, %v232_v38  ;;  %v796_v38 = vld [vmem:[#allocation6 + $0x208] sm:$0xff]  ;;  %v3485_v42 = vcombine.high %v795_v36, %v799_v37 }
 0x145   :  { %v235_v45 = vpack.c.bf16 %v233_v41, %v233_v41  ;;  %v3478_v41 = vcombine.low %v788_v29, %v792_v31  ;;  %v3487_v43 = vcombine.high %v796_v38, %v800_v39  ;;  %v3486_v49 = vcombine.low %v796_v38, %v800_v39 }
 0x147   :  { %673 = vmatprep.mubr.bf16.mxu1 %v235_v45  ;;  %714 = vmatprep.mubr.bf16.mxu0 %v235_v45  ;;  %v807_v45 = vld [vmem:[#allocation6 + $0x260] sm:$0xff] }
 0x148   :  { %674 = vmatmul.mubr.bf16.vlgmr.msra.gmra.mrb[0].mxu1 %v234_v46  ;;  %715 = vmatmul.mubr.bf16.vlgmr.msra.gmra.mrb[4].mxu0 %v234_v46  ;;  %v804_v46 = vld [vmem:[#allocation6 + $0x248] sm:$0xff]  ;;  %v3493_v50 = vcombine.high %v803_v44, %v807_v45 }
 0x149   :  { %2309 = vmatpush1.bf16.msra.mxu1 %v3420_v21  ;;  %2391 = vmatpush1.bf16.msra.mxu0 %v3422_v24  ;;  %v3460_v21 = vcombine.low %v771_v9, %v775_v10  ;;  %v3471_v24 = vcombine.high %v780_v19, %v784_v20 }
 0x14a   :  { %2310 = vmatprep.subr.bf16.mxu1 %v3429_v47  ;;  %2392 = vmatprep.subr.bf16.mxu0 %v3431_v48  ;;  %v808_v47 = vld [vmem:[#allocation6 + $0x268] sm:$0xff]  ;;  %v3484_v48 = vcombine.low %v795_v36, %v799_v37 }
 0x14b   :  { %v3495_v51 = vcombine.high %v804_v46, %v808_v47  ;;  %v3494_v57 = vcombine.low %v804_v46, %v808_v47  ;;  %v856_v37 = vld [vmem:[#allocation6 + $0x3e8] sm:$0xff] }
 0x14d   :  { %2311 = vmatpush1.bf16.msra.mxu1 %v3428_v53  ;;  %2393 = vmatpush1.bf16.msra.mxu0 %v3430_v54  ;;  %v815_v53 = vld [vmem:[#allocation6 + $0x2a0] sm:$0xff]  ;;  %v812_v54 = vld [vmem:[#allocation6 + $0x288] sm:$0xff] }
 0x14e   :  { %2312 = vmatprep.subr.bf16.mxu1 %v3437_v55  ;;  %2394 = vmatprep.subr.bf16.mxu0 %v3439_v56  ;;  %v816_v55 = vld [vmem:[#allocation6 + $0x2a8] sm:$0xff]  ;;  %v3492_v56 = vcombine.low %v803_v44, %v807_v45  ;;  %v3501_v58 = vcombine.high %v811_v52, %v815_v53 }
 0x14f   :  { %v3503_v59 = vcombine.high %v812_v54, %v816_v55  ;;  %v3502_v1 = vcombine.low %v812_v54, %v816_v55  ;;  %v864_v45 = vld [vmem:[#allocation6 + $0x428] sm:$0xff] }
 0x151   :  { %2313 = vmatpush1.bf16.msra.mxu1 %v3436_v61  ;;  %2395 = vmatpush1.bf16.msra.mxu0 %v3438_v62  ;;  %v823_v61 = vld [vmem:[#allocation6 + $0x2e0] sm:$0xff]  ;;  %v820_v62 = vld [vmem:[#allocation6 + $0x2c8] sm:$0xff] }
 0x152   :  { %2314 = vmatprep.subr.bf16.mxu1 %v3445_v63  ;;  %2396 = vmatprep.subr.bf16.mxu0 %v3447_v0  ;;  %v824_v63 = vld [vmem:[#allocation6 + $0x2e8] sm:$0xff]  ;;  %v3500_v0 = vcombine.low %v811_v52, %v815_v53  ;;  %v3509_v2 = vcombine.high %v819_v60, %v823_v61 }
 0x153   :  { %v3511_v3 = vcombine.high %v820_v62, %v824_v63  ;;  %v3510_v9 = vcombine.low %v820_v62, %v824_v63 }
 0x155   :  { %2315 = vmatpush1.bf16.msra.mxu1 %v3444_v5  ;;  %2397 = vmatpush1.bf16.msra.mxu0 %v3446_v6  ;;  %v831_v5 = vld [vmem:[#allocation6 + $0x320] sm:$0xff]  ;;  %v828_v6 = vld [vmem:[#allocation6 + $0x308] sm:$0xff] }
 0x156   :  { %2316 = vmatprep.subr.bf16.mxu1 %v3453_v7  ;;  %2398 = vmatprep.subr.bf16.mxu0 %v3455_v8  ;;  %v832_v7 = vld [vmem:[#allocation6 + $0x328] sm:$0xff]  ;;  %v3508_v8 = vcombine.low %v819_v60, %v823_v61  ;;  %v3517_v10 = vcombine.high %v827_v4, %v831_v5 }
 0x157   :  { %v3519_v11 = vcombine.high %v828_v6, %v832_v7  ;;  %v3518_v17 = vcombine.low %v828_v6, %v832_v7  ;;  %v868_v6 = vld [vmem:[#allocation6 + $0x448] sm:$0xff] }
 0x158   :  { %v872_v7 = vld [vmem:[#allocation6 + $0x468] sm:$0xff] }
 0x159   :  { %2317 = vmatpush1.bf16.msra.mxu1 %v3452_v13  ;;  %2399 = vmatpush1.bf16.msra.mxu0 %v3454_v14  ;;  %v839_v13 = vld [vmem:[#allocation6 + $0x360] sm:$0xff]  ;;  %v836_v14 = vld [vmem:[#allocation6 + $0x348] sm:$0xff] }
 0x15a   :  { %2318 = vmatprep.subr.bf16.mxu1 %v3461_v15  ;;  %2400 = vmatprep.subr.bf16.mxu0 %v3463_v16  ;;  %v840_v15 = vld [vmem:[#allocation6 + $0x368] sm:$0xff]  ;;  %v3516_v16 = vcombine.low %v827_v4, %v831_v5  ;;  %v3525_v18 = vcombine.high %v835_v12, %v839_v13  ;;  %v3524_v20 = vcombine.low %v835_v12, %v839_v13  ;;  %v871_v5 = vld [vmem:[#allocation6 + $0x460] sm:$0xff] }
 0x15b   :  { %v3527_v19 = vcombine.high %v836_v14, %v840_v15  ;;  %v3559_v12 = vcombine.high %v868_v6, %v872_v7  ;;  %v879_v13 = vld [vmem:[#allocation6 + $0x4a0] sm:$0xff] }
 0x15d   :  { %2319 = vmatpush1.bf16.msra.mxu1 %v3460_v21  ;;  %2401 = vmatpush1.bf16.msra.mxu0 %v3462_v22  ;;  %v3526_v21 = vcombine.low %v836_v14, %v840_v15  ;;  %v843_v22 = vld [vmem:[#allocation6 + $0x380] sm:$0xff]  ;;  %v876_v14 = vld [vmem:[#allocation6 + $0x488] sm:$0xff] }
 0x15e   :  { %2320 = vmatprep.subr.bf16.mxu1 %v3469_v23  ;;  %2402 = vmatprep.subr.bf16.mxu0 %v3471_v24  ;;  %v847_v23 = vld [vmem:[#allocation6 + $0x3a0] sm:$0xff]  ;;  %v844_v24 = vld [vmem:[#allocation6 + $0x388] sm:$0xff] }
 0x15f   :  { %v3533_v25 = vcombine.high %v843_v22, %v847_v23  ;;  %v3532_v29 = vcombine.low %v843_v22, %v847_v23  ;;  %v3534_v31 = vcombine.low %v844_v24, %v848_v26  ;;  %v880_v15 = vld [vmem:[#allocation6 + $0x4a8] sm:$0xff]  ;;  %v887_v22 = vld [vmem:[#allocation6 + $0x4e0] sm:$0xff] }
 0x160   :  { %v884_v23 = vld [vmem:[#allocation6 + $0x4c8] sm:$0xff] }
 0x161   :  { %2321 = vmatpush1.bf16.msra.mxu1 %v3468_v32  ;;  %2403 = vmatpush1.bf16.msra.mxu0 %v3470_v33  ;;  %v3535_v32 = vcombine.high %v844_v24, %v848_v26  ;;  %v851_v33 = vld [vmem:[#allocation6 + $0x3c0] sm:$0xff]  ;;  %v888_v24 = vld [vmem:[#allocation6 + $0x4e8] sm:$0xff]  ;;  %v3566_v26 = vcombine.low %v876_v14, %v880_v15 }
 0x162   :  { %2322 = vmatprep.subr.bf16.mxu1 %v3477_v34  ;;  %2404 = vmatprep.subr.bf16.mxu0 %v3479_v35  ;;  %v855_v34 = vld [vmem:[#allocation6 + $0x3e0] sm:$0xff]  ;;  %v852_v35 = vld [vmem:[#allocation6 + $0x3c8] sm:$0xff] }
 0x163   :  { %v3541_v36 = vcombine.high %v851_v33, %v855_v34  ;;  %v3540_v38 = vcombine.low %v851_v33, %v855_v34  ;;  %v3542_v39 = vcombine.low %v852_v35, %v856_v37  ;;  %v895_v33 = vld [vmem:[#allocation6 + $0x520] sm:$0xff]  ;;  %v892_v34 = vld [vmem:[#allocation6 + $0x508] sm:$0xff] }
 0x165   :  { %2323 = vmatpush1.bf16.msra.mxu1 %v3476_v40  ;;  %2405 = vmatpush1.bf16.msra.mxu0 %v3478_v41  ;;  %v3543_v40 = vcombine.high %v852_v35, %v856_v37  ;;  %v859_v41 = vld [vmem:[#allocation6 + $0x400] sm:$0xff]  ;;  %v896_v35 = vld [vmem:[#allocation6 + $0x528] sm:$0xff]  ;;  %v3574_v37 = vcombine.low %v884_v23, %v888_v24 }
 0x166   :  { %2324 = vmatprep.subr.bf16.mxu1 %v3485_v42  ;;  %2406 = vmatprep.subr.bf16.mxu0 %v3487_v43  ;;  %v863_v42 = vld [vmem:[#allocation6 + $0x420] sm:$0xff]  ;;  %v860_v43 = vld [vmem:[#allocation6 + $0x408] sm:$0xff] }
 0x167   :  { %v3549_v44 = vcombine.high %v859_v41, %v863_v42  ;;  %v3548_v46 = vcombine.low %v859_v41, %v863_v42  ;;  %v3550_v47 = vcombine.low %v860_v43, %v864_v45  ;;  %v903_v41 = vld [vmem:[#allocation6 + $0x560] sm:$0xff]  ;;  %v900_v42 = vld [vmem:[#allocation6 + $0x548] sm:$0xff] }
 0x169   :  { %2325 = vmatpush1.bf16.msra.mxu1 %v3484_v48  ;;  %2407 = vmatpush1.bf16.msra.mxu0 %v3486_v49  ;;  %v3551_v48 = vcombine.high %v860_v43, %v864_v45  ;;  %v4261_v49 = vld [vmem:[%s4336_s5 + $0x2] sm:$0xf]  ;;  %v904_v43 = vld [vmem:[#allocation6 + $0x568] sm:$0xff]  ;;  %v3582_v45 = vcombine.low %v892_v34, %v896_v35 }
 0x16a   :  { %2326 = vmatprep.subr.bf16.mxu1 %v3493_v50  ;;  %2408 = vmatprep.subr.bf16.mxu0 %v3495_v51  ;;  %v315_v50 = vsub.s32 3, %v4245_v27  ;;  %v304_v51 = vrot.slane %v4261_v49, %v4248_v28  ;;  %v308_v52 = vrot.slane %v4261_v49, %v4254_v30 }
 0x16c   :  { %v316_v53 = vrot.slane %v4261_v49, %v315_v50 }
 0x16d   :  { %2327 = vmatpush1.bf16.msra.mxu1 %v3492_v56  ;;  %2409 = vmatpush1.bf16.msra.mxu0 %v3494_v57 }
 0x16e   :  { %2328 = vmatprep.subr.bf16.mxu1 %v3501_v58  ;;  %2410 = vmatprep.subr.bf16.mxu0 %v3503_v59 }
 0x171   :  { %2329 = vmatpush1.bf16.msra.mxu1 %v3500_v0  ;;  %2411 = vmatpush1.bf16.msra.mxu0 %v3502_v1 }
 0x172   :  { %2330 = vmatprep.subr.bf16.mxu1 %v3509_v2  ;;  %2412 = vmatprep.subr.bf16.mxu0 %v3511_v3  ;;  %v867_v3 = vld [vmem:[#allocation6 + $0x440] sm:$0xff] }
 0x175   :  { %2331 = vmatpush1.bf16.msra.mxu1 %v3508_v8  ;;  %2413 = vmatpush1.bf16.msra.mxu0 %v3510_v9 }
 0x176   :  { %2332 = vmatprep.subr.bf16.mxu1 %v3517_v10  ;;  %2414 = vmatprep.subr.bf16.mxu0 %v3519_v11  ;;  %v875_v10 = vld [vmem:[#allocation6 + $0x480] sm:$0xff]  ;;  %v3557_v11 = vcombine.high %v867_v3, %v871_v5 }
 0x179   :  { %2333 = vmatpush1.bf16.msra.mxu1 %v3516_v16  ;;  %2415 = vmatpush1.bf16.msra.mxu0 %v3518_v17  ;;  %v3556_v17 = vcombine.low %v867_v3, %v871_v5  ;;  %v923_v3 = vld [vmem:[#allocation6 + $0x600] sm:$0xff]  ;;  %v924_v5 = vld [vmem:[#allocation6 + $0x608] sm:$0xff] }
 0x17a   :  { %2334 = vmatprep.subr.bf16.mxu1 %v3525_v18  ;;  %2416 = vmatprep.subr.bf16.mxu0 %v3527_v19  ;;  %v3558_v18 = vcombine.low %v868_v6, %v872_v7  ;;  %v3565_v19 = vcombine.high %v875_v10, %v879_v13  ;;  %v928_v6 = vld [vmem:[#allocation6 + $0x628] sm:$0xff] }
 0x17d   :  { %2335 = vmatpush1.bf16.msra.mxu1 %v3524_v20  ;;  %2417 = vmatpush1.bf16.msra.mxu0 %v3526_v21  ;;  %v3567_v20 = vcombine.high %v876_v14, %v880_v15  ;;  %v883_v21 = vld [vmem:[#allocation6 + $0x4c0] sm:$0xff]  ;;  %v932_v15 = vld [vmem:[#allocation6 + $0x648] sm:$0xff] }
 0x17e   :  { %2336 = vmatprep.subr.bf16.mxu1 %v3533_v25  ;;  %2418 = vmatprep.subr.bf16.mxu0 %v3535_v32  ;;  %v3564_v25 = vcombine.low %v875_v10, %v879_v13  ;;  %v891_v32 = vld [vmem:[#allocation6 + $0x500] sm:$0xff] }
 0x17f   :  { %v931_v13 = vld [vmem:[#allocation6 + $0x640] sm:$0xff] }
 0x180   :  { %v935_v14 = vld [vmem:[#allocation6 + $0x660] sm:$0xff] }
 0x181   :  { %2337 = vmatpush1.bf16.msra.mxu1 %v3532_v29  ;;  %2419 = vmatpush1.bf16.msra.mxu0 %v3534_v31  ;;  %v3573_v29 = vcombine.high %v883_v21, %v887_v22  ;;  %v3575_v31 = vcombine.high %v884_v23, %v888_v24  ;;  %v943_v23 = vld [vmem:[#allocation6 + $0x6a0] sm:$0xff]  ;;  %v940_v24 = vld [vmem:[#allocation6 + $0x688] sm:$0xff] }
 0x182   :  { %2338 = vmatprep.subr.bf16.mxu1 %v3541_v36  ;;  %2420 = vmatprep.subr.bf16.mxu0 %v3543_v40  ;;  %v3572_v36 = vcombine.low %v883_v21, %v887_v22  ;;  %v899_v40 = vld [vmem:[#allocation6 + $0x540] sm:$0xff] }
 0x183   :  { %v939_v22 = vld [vmem:[#allocation6 + $0x680] sm:$0xff] }
 0x185   :  { %2339 = vmatpush1.bf16.msra.mxu1 %v3540_v38  ;;  %2421 = vmatpush1.bf16.msra.mxu0 %v3542_v39  ;;  %v3581_v38 = vcombine.high %v891_v32, %v895_v33  ;;  %v3583_v39 = vcombine.high %v892_v34, %v896_v35  ;;  %v951_v34 = vld [vmem:[#allocation6 + $0x6e0] sm:$0xff]  ;;  %v948_v35 = vld [vmem:[#allocation6 + $0x6c8] sm:$0xff] }
 0x186   :  { %2349 = vmatprep.subr.bf16.mxu1 %v3549_v44  ;;  %2431 = vmatprep.subr.bf16.mxu0 %v3551_v48  ;;  %v3580_v44 = vcombine.low %v891_v32, %v895_v33  ;;  %v907_v48 = vld [vmem:[#allocation6 + $0x580] sm:$0xff] }
 0x187   :  { %v947_v33 = vld [vmem:[#allocation6 + $0x6c0] sm:$0xff] }
 0x21b   :  { %v675_v54 = vpop.f32.mrb[0].mxu1  ;;  %v4271_v55 = vpop.f32.mrb[4].mxu0 }
 0x21c   :  { %v676_v56 = vadd.f32 %v675_v54, %v304_v51  ;;  %v677_v57 = vpop.f32.mrb[1].mxu1  ;;  %v718_v58 = vpop.f32.mrb[5].mxu0  ;;  %v911_v51 = vld [vmem:[#allocation6 + $0x5a0] sm:$0xff]  ;;  %v3588_v54 = vcombine.low %v899_v40, %v903_v41 }
 0x21d   :  { %v678_v59 = vadd.f32 %v677_v57, %v308_v52  ;;  %v719_v60 = vadd.f32 %v718_v58, %v316_v53  ;;  %v679_v61 = vpop.f32.mrb[2].mxu1  ;;  %v720_v62 = vpop.f32.mrb[6].mxu0  ;;  %v908_v52 = vld [vmem:[#allocation6 + $0x588] sm:$0xff]  ;;  %v3597_v57 = vcombine.high %v907_v48, %v911_v51 }
 0x21e   :  { %v723_v63 = vmax.f32 %v676_v56, 0.0  ;;  %v680_v0 = vpop.f32.mrb[3].mxu1  ;;  %v721_v1 = vpop.f32.mrb[7].mxu0  ;;  %v912_v53 = vld [vmem:[#allocation6 + $0x5a8] sm:$0xff]  ;;  %v3590_v56 = vcombine.low %v900_v42, %v904_v43 }
 0x21f   :  { %v724_v2 = vmax.f32 %v678_v59, 0.0  ;;  %v726_v4 = vmax.f32 %v719_v60, 0.0  ;;  %v3599_v58 = vcombine.high %v908_v52, %v912_v53  ;;  %v915_v59 = vld [vmem:[#allocation6 + $0x5c0] sm:$0xff]  ;;  %v916_v61 = vld [vmem:[#allocation6 + $0x5c8] sm:$0xff]  ;;  %v3598_v0 = vcombine.low %v908_v52, %v912_v53 }
 0x220   :  { %v4275_v9 = vpack.c.bf16 %v723_v63, %v723_v63  ;;  %v919_v60 = vld [vmem:[#allocation6 + $0x5e0] sm:$0xff]  ;;  %v920_v62 = vld [vmem:[#allocation6 + $0x5e8] sm:$0xff]  ;;  %v3596_v63 = vcombine.low %v907_v48, %v911_v51 }
 0x221   :  { %v4273_v8 = vpack.c.bf16 %v724_v2, %v724_v2  ;;  %v4279_v16 = vpack.c.bf16 %v726_v4, %v726_v4  ;;  %v3605_v1 = vcombine.high %v915_v59, %v919_v60  ;;  %v3607_v2 = vcombine.high %v916_v61, %v920_v62  ;;  %v927_v4 = vld [vmem:[#allocation6 + $0x620] sm:$0xff]  ;;  %v964_v53 = vld [vmem:[#allocation6 + $0x748] sm:$0xff] }
 0x222   :  { %v3604_v7 = vcombine.low %v915_v59, %v919_v60  ;;  %v3606_v10 = vcombine.low %v916_v61, %v920_v62  ;;  %v963_v51 = vld [vmem:[#allocation6 + $0x740] sm:$0xff] }
 0x223   :  { %2340 = vmatprep.mubr.bf16.mxu1 %v4273_v8  ;;  %2422 = vmatprep.mubr.bf16.mxu0 %v4273_v8  ;;  %v967_v52 = vld [vmem:[#allocation6 + $0x760] sm:$0xff] }
 0x224   :  { %2341 = vmatmul.mubr.bf16.vlgmr.msra.gmra.mrb[4].mxu1 %v4275_v9  ;;  %2423 = vmatmul.mubr.bf16.vlgmr.msra.gmra.mrb[8].mxu0 %v4275_v9  ;;  %v3653_v59 = vcombine.high %v963_v51, %v967_v52  ;;  %v971_v61 = vld [vmem:[#allocation6 + $0x780] sm:$0xff] }
 0x225   :  { %2350 = vmatpush1.bf16.msra.mxu1 %v3548_v46  ;;  %2432 = vmatpush1.bf16.msra.mxu0 %v3550_v47  ;;  %v3589_v46 = vcombine.high %v899_v40, %v903_v41  ;;  %v3591_v47 = vcombine.high %v900_v42, %v904_v43  ;;  %v955_v41 = vld [vmem:[#allocation6 + $0x700] sm:$0xff]  ;;  %v956_v43 = vld [vmem:[#allocation6 + $0x708] sm:$0xff] }
 0x226   :  { %2381 = vmatprep.mubr.bf16.mxu1 %v4279_v16  ;;  %2463 = vmatprep.mubr.bf16.mxu0 %v4279_v16  ;;  %v959_v42 = vld [vmem:[#allocation6 + $0x720] sm:$0xff] }
 0x227   :  { %2351 = vmatprep.subr.bf16.mxu1 %v3557_v11  ;;  %2433 = vmatprep.subr.bf16.mxu0 %v3559_v12  ;;  %v3613_v11 = vcombine.high %v923_v3, %v927_v4  ;;  %v3615_v12 = vcombine.high %v924_v5, %v928_v6  ;;  %v975_v62 = vld [vmem:[#allocation6 + $0x7a0] sm:$0xff] }
 0x229   :  { %2352 = vmatpush1.bf16.msra.mxu1 %v3556_v17  ;;  %2434 = vmatpush1.bf16.msra.mxu0 %v3558_v18  ;;  %v936_v17 = vld [vmem:[#allocation6 + $0x668] sm:$0xff]  ;;  %v3612_v18 = vcombine.low %v923_v3, %v927_v4  ;;  %v3661_v4 = vcombine.high %v971_v61, %v975_v62 }
 0x22a   :  { %2353 = vmatprep.subr.bf16.mxu1 %v3565_v19  ;;  %2435 = vmatprep.subr.bf16.mxu0 %v3567_v20  ;;  %v3614_v19 = vcombine.low %v924_v5, %v928_v6  ;;  %v3621_v20 = vcombine.high %v931_v13, %v935_v14  ;;  %v3623_v21 = vcombine.high %v932_v15, %v936_v17  ;;  %v979_v6 = vld [vmem:[#allocation6 + $0x7c0] sm:$0xff] }
 0x22d   :  { %2354 = vmatpush1.bf16.msra.mxu1 %v3564_v25  ;;  %2436 = vmatpush1.bf16.msra.mxu0 %v3566_v26  ;;  %v944_v25 = vld [vmem:[#allocation6 + $0x6a8] sm:$0xff]  ;;  %v3620_v26 = vcombine.low %v931_v13, %v935_v14 }
 0x22e   :  { %2355 = vmatprep.subr.bf16.mxu1 %v3573_v29  ;;  %2437 = vmatprep.subr.bf16.mxu0 %v3575_v31  ;;  %v3622_v29 = vcombine.low %v932_v15, %v936_v17  ;;  %v3629_v31 = vcombine.high %v939_v22, %v943_v23  ;;  %v3631_v32 = vcombine.high %v940_v24, %v944_v25 }
 0x231   :  { %2356 = vmatpush1.bf16.msra.mxu1 %v3572_v36  ;;  %2438 = vmatpush1.bf16.msra.mxu0 %v3574_v37  ;;  %v952_v36 = vld [vmem:[#allocation6 + $0x6e8] sm:$0xff]  ;;  %v3628_v37 = vcombine.low %v939_v22, %v943_v23 }
 0x232   :  { %2357 = vmatprep.subr.bf16.mxu1 %v3581_v38  ;;  %2439 = vmatprep.subr.bf16.mxu0 %v3583_v39  ;;  %v3630_v38 = vcombine.low %v940_v24, %v944_v25  ;;  %v3637_v39 = vcombine.high %v947_v33, %v951_v34  ;;  %v3639_v40 = vcombine.high %v948_v35, %v952_v36 }
 0x235   :  { %2358 = vmatpush1.bf16.msra.mxu1 %v3580_v44  ;;  %2440 = vmatpush1.bf16.msra.mxu0 %v3582_v45  ;;  %v960_v44 = vld [vmem:[#allocation6 + $0x728] sm:$0xff]  ;;  %v3636_v45 = vcombine.low %v947_v33, %v951_v34 }
 0x236   :  { %2359 = vmatprep.subr.bf16.mxu1 %v3589_v46  ;;  %2441 = vmatprep.subr.bf16.mxu0 %v3591_v47  ;;  %v3638_v46 = vcombine.low %v948_v35, %v952_v36  ;;  %v3645_v47 = vcombine.high %v955_v41, %v959_v42  ;;  %v3647_v48 = vcombine.high %v956_v43, %v960_v44 }
 0x239   :  { %2360 = vmatpush1.bf16.msra.mxu1 %v3588_v54  ;;  %2442 = vmatpush1.bf16.msra.mxu0 %v3590_v56  ;;  %v968_v54 = vld [vmem:[#allocation6 + $0x768] sm:$0xff]  ;;  %v3644_v56 = vcombine.low %v955_v41, %v959_v42 }
 0x23a   :  { %2361 = vmatprep.subr.bf16.mxu1 %v3597_v57  ;;  %2443 = vmatprep.subr.bf16.mxu0 %v3599_v58  ;;  %v3646_v57 = vcombine.low %v956_v43, %v960_v44  ;;  %v311_v58 = vsub.s32 2, %v4245_v27  ;;  %v3655_v60 = vcombine.high %v964_v53, %v968_v54 }
 0x23c   :  { %v312_v3 = vrot.slane %v4261_v49, %v311_v58  ;;  %v737_v49 = vld [vmem:[#allocation6 + $0x30] sm:$0xff] }
 0x23d   :  { %2362 = vmatpush1.bf16.msra.mxu1 %v3596_v63  ;;  %2444 = vmatpush1.bf16.msra.mxu0 %v3598_v0  ;;  %v972_v63 = vld [vmem:[#allocation6 + $0x788] sm:$0xff] }
 0x23e   :  { %2363 = vmatprep.subr.bf16.mxu1 %v3605_v1  ;;  %2445 = vmatprep.subr.bf16.mxu0 %v3607_v2  ;;  %v976_v0 = vld [vmem:[#allocation6 + $0x7a8] sm:$0xff]  ;;  %v3652_v1 = vcombine.low %v963_v51, %v967_v52  ;;  %v3654_v2 = vcombine.low %v964_v53, %v968_v54  ;;  %v717_v14 = vadd.f32 %v4271_v55, %v312_v3  ;;  %v742_v55 = vld [vmem:[#allocation6 + $0x58] sm:$0xff] }
 0x23f   :  { %v3663_v5 = vcombine.high %v972_v63, %v976_v0  ;;  %v3662_v13 = vcombine.low %v972_v63, %v976_v0  ;;  %v773_v0 = vld [vmem:[#allocation6 + $0x150] sm:$0xff]  ;;  %v778_v3 = vld [vmem:[#allocation6 + $0x178] sm:$0xff] }
 0x240   :  { %v725_v23 = vmax.f32 %v717_v14, 0.0 }
 0x241   :  { %2364 = vmatpush1.bf16.msra.mxu1 %v3604_v7  ;;  %2446 = vmatpush1.bf16.msra.mxu0 %v3606_v10  ;;  %v983_v7 = vld [vmem:[#allocation6 + $0x7e0] sm:$0xff]  ;;  %v980_v10 = vld [vmem:[#allocation6 + $0x7c8] sm:$0xff] }
 0x242   :  { %2365 = vmatprep.subr.bf16.mxu1 %v3613_v11  ;;  %2447 = vmatprep.subr.bf16.mxu0 %v3615_v12  ;;  %v984_v11 = vld [vmem:[#allocation6 + $0x7e8] sm:$0xff]  ;;  %v3660_v12 = vcombine.low %v971_v61, %v975_v62  ;;  %v3669_v15 = vcombine.high %v979_v6, %v983_v7  ;;  %v4290_v33 = vpack.c.bf16 %v725_v23, %v725_v23 }
 0x243   :  { %v3671_v17 = vcombine.high %v980_v10, %v984_v11  ;;  %v3670_v22 = vcombine.low %v980_v10, %v984_v11  ;;  %v781_v10 = vld [vmem:[#allocation6 + $0x190] sm:$0xff] }
 0x244   :  { %v785_v11 = vld [vmem:[#allocation6 + $0x1b0] sm:$0xff] }
 0x245   :  { %2366 = vmatpush1.bf16.msra.mxu1 %v3612_v18  ;;  %2448 = vmatpush1.bf16.msra.mxu0 %v3614_v19  ;;  %v733_v18 = vld [vmem:[#allocation6 + $0x10] sm:$0xff]  ;;  %v734_v19 = vld [vmem:[#allocation6 + $0x18] sm:$0xff] }
 0x246   :  { %2367 = vmatprep.subr.bf16.mxu1 %v3621_v20  ;;  %2449 = vmatprep.subr.bf16.mxu0 %v3623_v21  ;;  %v738_v20 = vld [vmem:[#allocation6 + $0x38] sm:$0xff]  ;;  %v3668_v21 = vcombine.low %v979_v6, %v983_v7  ;;  %v3425_v24 = vcombine.high %v733_v18, %v737_v49 }
 0x247   :  { %v3427_v25 = vcombine.high %v734_v19, %v738_v20  ;;  %v3426_v34 = vcombine.low %v734_v19, %v738_v20  ;;  %v793_v19 = vld [vmem:[#allocation6 + $0x1f0] sm:$0xff]  ;;  %v790_v20 = vld [vmem:[#allocation6 + $0x1d8] sm:$0xff] }
 0x249   :  { %2368 = vmatpush1.bf16.msra.mxu1 %v3620_v26  ;;  %2450 = vmatpush1.bf16.msra.mxu0 %v3622_v29  ;;  %v741_v26 = vld [vmem:[#allocation6 + $0x50] sm:$0xff] }
 0x24a   :  { %2369 = vmatprep.subr.bf16.mxu1 %v3629_v31  ;;  %2451 = vmatprep.subr.bf16.mxu0 %v3631_v32  ;;  %v745_v29 = vld [vmem:[#allocation6 + $0x70] sm:$0xff]  ;;  %v746_v31 = vld [vmem:[#allocation6 + $0x78] sm:$0xff]  ;;  %v3424_v32 = vcombine.low %v733_v18, %v737_v49 }
 0x24b   :  { %v3433_v35 = vcombine.high %v741_v26, %v745_v29  ;;  %v3435_v36 = vcombine.high %v742_v55, %v746_v31  ;;  %v3432_v41 = vcombine.low %v741_v26, %v745_v29  ;;  %v3434_v42 = vcombine.low %v742_v55, %v746_v31  ;;  %v789_v49 = vld [vmem:[#allocation6 + $0x1d0] sm:$0xff]  ;;  %v798_v55 = vld [vmem:[#allocation6 + $0x218] sm:$0xff] }
 0x24c   :  { %v797_v26 = vld [vmem:[#allocation6 + $0x210] sm:$0xff]  ;;  %v802_v31 = vld [vmem:[#allocation6 + $0x238] sm:$0xff] }
 0x24d   :  { %2370 = vmatpush1.bf16.msra.mxu1 %v3628_v37  ;;  %2452 = vmatpush1.bf16.msra.mxu0 %v3630_v38  ;;  %v749_v37 = vld [vmem:[#allocation6 + $0x90] sm:$0xff] }
 0x24e   :  { %2371 = vmatprep.subr.bf16.mxu1 %v3637_v39  ;;  %2453 = vmatprep.subr.bf16.mxu0 %v3639_v40  ;;  %v753_v38 = vld [vmem:[#allocation6 + $0xb0] sm:$0xff]  ;;  %v750_v39 = vld [vmem:[#allocation6 + $0x98] sm:$0xff] }
 0x24f   :  { %v754_v40 = vld [vmem:[#allocation6 + $0xb8] sm:$0xff]  ;;  %v3441_v43 = vcombine.high %v749_v37, %v753_v38  ;;  %v3440_v51 = vcombine.low %v749_v37, %v753_v38  ;;  %v801_v29 = vld [vmem:[#allocation6 + $0x230] sm:$0xff] }
 0x250   :  { %v3443_v44 = vcombine.high %v750_v39, %v754_v40  ;;  %v3442_v52 = vcombine.low %v750_v39, %v754_v40  ;;  %v805_v37 = vld [vmem:[#allocation6 + $0x250] sm:$0xff]  ;;  %v806_v39 = vld [vmem:[#allocation6 + $0x258] sm:$0xff] }
 0x251   :  { %2372 = vmatpush1.bf16.msra.mxu1 %v3636_v45  ;;  %2454 = vmatpush1.bf16.msra.mxu0 %v3638_v46  ;;  %v757_v45 = vld [vmem:[#allocation6 + $0xd0] sm:$0xff]  ;;  %v810_v40 = vld [vmem:[#allocation6 + $0x278] sm:$0xff] }
 0x252   :  { %2373 = vmatprep.subr.bf16.mxu1 %v3645_v47  ;;  %2455 = vmatprep.subr.bf16.mxu0 %v3647_v48  ;;  %v761_v46 = vld [vmem:[#allocation6 + $0xf0] sm:$0xff]  ;;  %v758_v47 = vld [vmem:[#allocation6 + $0xd8] sm:$0xff] }
 0x253   :  { %v762_v48 = vld [vmem:[#allocation6 + $0xf8] sm:$0xff]  ;;  %v3449_v53 = vcombine.high %v757_v45, %v761_v46  ;;  %v809_v38 = vld [vmem:[#allocation6 + $0x270] sm:$0xff] }
 0x254   :  { %v3451_v54 = vcombine.high %v758_v47, %v762_v48  ;;  %v3450_v61 = vcombine.low %v758_v47, %v762_v48  ;;  %v814_v47 = vld [vmem:[#allocation6 + $0x298] sm:$0xff] }
 0x255   :  { %2374 = vmatpush1.bf16.msra.mxu1 %v3644_v56  ;;  %2456 = vmatpush1.bf16.msra.mxu0 %v3646_v57  ;;  %v765_v56 = vld [vmem:[#allocation6 + $0x110] sm:$0xff]  ;;  %v818_v48 = vld [vmem:[#allocation6 + $0x2b8] sm:$0xff] }
 0x256   :  { %2375 = vmatprep.subr.bf16.mxu1 %v3653_v59  ;;  %2457 = vmatprep.subr.bf16.mxu0 %v3655_v60  ;;  %v769_v57 = vld [vmem:[#allocation6 + $0x130] sm:$0xff]  ;;  %v770_v59 = vld [vmem:[#allocation6 + $0x138] sm:$0xff]  ;;  %v3448_v60 = vcombine.low %v757_v45, %v761_v46 }
 0x257   :  { %v3457_v62 = vcombine.high %v765_v56, %v769_v57  ;;  %v813_v45 = vld [vmem:[#allocation6 + $0x290] sm:$0xff] }
 0x258   :  { %v817_v46 = vld [vmem:[#allocation6 + $0x2b0] sm:$0xff] }
 0x259   :  { %2376 = vmatpush1.bf16.msra.mxu1 %v3652_v1  ;;  %2458 = vmatpush1.bf16.msra.mxu0 %v3654_v2  ;;  %v777_v1 = vld [vmem:[#allocation6 + $0x170] sm:$0xff]  ;;  %v774_v2 = vld [vmem:[#allocation6 + $0x158] sm:$0xff] }
 0x25a   :  { %2377 = vmatprep.subr.bf16.mxu1 %v3661_v4  ;;  %2459 = vmatprep.subr.bf16.mxu0 %v3663_v5  ;;  %v3456_v4 = vcombine.low %v765_v56, %v769_v57  ;;  %v3465_v6 = vcombine.high %v773_v0, %v777_v1  ;;  %v3467_v7 = vcombine.high %v774_v2, %v778_v3  ;;  %v821_v56 = vld [vmem:[#allocation6 + $0x2d0] sm:$0xff] }
 0x25b   :  { %v3464_v14 = vcombine.low %v773_v0, %v777_v1  ;;  %v825_v57 = vld [vmem:[#allocation6 + $0x2f0] sm:$0xff] }
 0x25c   :  { %v829_v0 = vld [vmem:[#allocation6 + $0x310] sm:$0xff] }
 0x25d   :  { %2378 = vmatpush1.bf16.msra.mxu1 %v3660_v12  ;;  %2460 = vmatpush1.bf16.msra.mxu0 %v3662_v13  ;;  %v782_v12 = vld [vmem:[#allocation6 + $0x198] sm:$0xff]  ;;  %v833_v1 = vld [vmem:[#allocation6 + $0x330] sm:$0xff] }
 0x25e   :  { %2379 = vmatprep.subr.bf16.mxu1 %v3669_v15  ;;  %2461 = vmatprep.subr.bf16.mxu0 %v3671_v17  ;;  %v786_v13 = vld [vmem:[#allocation6 + $0x1b8] sm:$0xff]  ;;  %v3466_v15 = vcombine.low %v774_v2, %v778_v3  ;;  %v3473_v17 = vcombine.high %v781_v10, %v785_v11 }
 0x25f   :  { %v3475_v18 = vcombine.high %v782_v12, %v786_v13  ;;  %v3474_v23 = vcombine.low %v782_v12, %v786_v13  ;;  %v830_v2 = vld [vmem:[#allocation6 + $0x318] sm:$0xff] }
 0x260   :  { %v834_v3 = vld [vmem:[#allocation6 + $0x338] sm:$0xff] }
 0x261   :  { %2380 = vmatpush1.bf16.msra.mxu1 %v3668_v21  ;;  %2462 = vmatpush1.bf16.msra.mxu0 %v3670_v22  ;;  %v794_v21 = vld [vmem:[#allocation6 + $0x1f8] sm:$0xff]  ;;  %v3472_v22 = vcombine.low %v781_v10, %v785_v11  ;;  %v837_v10 = vld [vmem:[#allocation6 + $0x350] sm:$0xff] }
 0x262   :  { %2472 = vmatprep.subr.bf16.mxu1 %v3425_v24  ;;  %2554 = vmatprep.subr.bf16.mxu0 %v3427_v25  ;;  %v3481_v24 = vcombine.high %v789_v49, %v793_v19  ;;  %v3483_v25 = vcombine.high %v790_v20, %v794_v21  ;;  %v841_v11 = vld [vmem:[#allocation6 + $0x370] sm:$0xff]  ;;  %v838_v12 = vld [vmem:[#allocation6 + $0x358] sm:$0xff] }
 0x263   :  { %v842_v13 = vld [vmem:[#allocation6 + $0x378] sm:$0xff] }
 0x264   :  { %2382 = vmatmul.mubr.bf16.vlgmr.msra.gmra.mrb[4].mxu1 %v4290_v33  ;;  %2464 = vmatmul.mubr.bf16.vlgmr.msra.gmra.mrb[8].mxu0 %v4290_v33 }
 0x265   :  { %2473 = vmatpush1.bf16.msra.mxu1 %v3424_v32  ;;  %2504 = vmatprep.mubr.bf16.mxu1 %v4273_v8  ;;  %v3480_v32 = vcombine.low %v789_v49, %v793_v19  ;;  %v845_v49 = vld [vmem:[#allocation6 + $0x390] sm:$0xff] }
 0x266   :  { %2555 = vmatpush1.bf16.msra.mxu0 %v3426_v34  ;;  %2586 = vmatprep.mubr.bf16.mxu0 %v4273_v8  ;;  %v766_v8 = vld [vmem:[#allocation6 + $0x118] sm:$0xff]  ;;  %v3482_v34 = vcombine.low %v790_v20, %v794_v21  ;;  %v849_v19 = vld [vmem:[#allocation6 + $0x3b0] sm:$0xff] }
 0x267   :  { %2474 = vmatprep.subr.bf16.mxu1 %v3433_v35  ;;  %2556 = vmatprep.subr.bf16.mxu0 %v3435_v36  ;;  %v3459_v63 = vcombine.high %v766_v8, %v770_v59  ;;  %v3458_v5 = vcombine.low %v766_v8, %v770_v59  ;;  %v3489_v35 = vcombine.high %v797_v26, %v801_v29  ;;  %v822_v8 = vld [vmem:[#allocation6 + $0x2d8] sm:$0xff] }
 0x268   :  { %v3491_v36 = vcombine.high %v798_v55, %v802_v31  ;;  %v826_v59 = vld [vmem:[#allocation6 + $0x2f8] sm:$0xff] }
 0x269   :  { %2475 = vmatpush1.bf16.msra.mxu1 %v3432_v41  ;;  %v3488_v41 = vcombine.low %v797_v26, %v801_v29  ;;  %v846_v20 = vld [vmem:[#allocation6 + $0x398] sm:$0xff]  ;;  %v853_v26 = vld [vmem:[#allocation6 + $0x3d0] sm:$0xff] }
 0x26a   :  { %2557 = vmatpush1.bf16.msra.mxu0 %v3434_v42  ;;  %2476 = vmatprep.subr.bf16.mxu1 %v3441_v43  ;;  %v3490_v42 = vcombine.low %v798_v55, %v802_v31  ;;  %v3497_v43 = vcombine.high %v805_v37, %v809_v38  ;;  %v850_v21 = vld [vmem:[#allocation6 + $0x3b8] sm:$0xff]  ;;  %v857_v29 = vld [vmem:[#allocation6 + $0x3f0] sm:$0xff] }
 0x26b   :  { %2558 = vmatprep.subr.bf16.mxu0 %v3443_v44  ;;  %v3499_v44 = vcombine.high %v806_v39, %v810_v40  ;;  %v854_v55 = vld [vmem:[#allocation6 + $0x3d8] sm:$0xff] }
 0x26c   :  { %v858_v31 = vld [vmem:[#allocation6 + $0x3f8] sm:$0xff] }
 0x26d   :  { %2477 = vmatpush1.bf16.msra.mxu1 %v3440_v51  ;;  %v3496_v51 = vcombine.low %v805_v37, %v809_v38  ;;  %v861_v37 = vld [vmem:[#allocation6 + $0x410] sm:$0xff] }
 0x26e   :  { %2559 = vmatpush1.bf16.msra.mxu0 %v3442_v52  ;;  %2478 = vmatprep.subr.bf16.mxu1 %v3449_v53  ;;  %v3498_v52 = vcombine.low %v806_v39, %v810_v40  ;;  %v3505_v53 = vcombine.high %v813_v45, %v817_v46  ;;  %v865_v38 = vld [vmem:[#allocation6 + $0x430] sm:$0xff]  ;;  %v862_v39 = vld [vmem:[#allocation6 + $0x418] sm:$0xff] }
 0x26f   :  { %2560 = vmatprep.subr.bf16.mxu0 %v3451_v54  ;;  %v3507_v54 = vcombine.high %v814_v47, %v818_v48  ;;  %v866_v40 = vld [vmem:[#allocation6 + $0x438] sm:$0xff] }
 0x271   :  { %2479 = vmatpush1.bf16.msra.mxu1 %v3448_v60  ;;  %v3504_v60 = vcombine.low %v813_v45, %v817_v46  ;;  %v869_v45 = vld [vmem:[#allocation6 + $0x450] sm:$0xff] }
 0x272   :  { %2561 = vmatpush1.bf16.msra.mxu0 %v3450_v61  ;;  %2480 = vmatprep.subr.bf16.mxu1 %v3457_v62  ;;  %v3506_v61 = vcombine.low %v814_v47, %v818_v48  ;;  %v3513_v62 = vcombine.high %v821_v56, %v825_v57  ;;  %v873_v46 = vld [vmem:[#allocation6 + $0x470] sm:$0xff]  ;;  %v3552_v47 = vcombine.low %v861_v37, %v865_v38  ;;  %v870_v48 = vld [vmem:[#allocation6 + $0x458] sm:$0xff] }
 0x273   :  { %2562 = vmatprep.subr.bf16.mxu0 %v3459_v63  ;;  %v3515_v63 = vcombine.high %v822_v8, %v826_v59 }
 0x275   :  { %2481 = vmatpush1.bf16.msra.mxu1 %v3456_v4  ;;  %v3512_v4 = vcombine.low %v821_v56, %v825_v57  ;;  %v881_v56 = vld [vmem:[#allocation6 + $0x4b0] sm:$0xff] }
 0x276   :  { %2563 = vmatpush1.bf16.msra.mxu0 %v3458_v5  ;;  %2482 = vmatprep.subr.bf16.mxu1 %v3465_v6  ;;  %v3514_v5 = vcombine.low %v822_v8, %v826_v59  ;;  %v3521_v6 = vcombine.high %v829_v0, %v833_v1  ;;  %v878_v8 = vld [vmem:[#allocation6 + $0x498] sm:$0xff] }
 0x277   :  { %2564 = vmatprep.subr.bf16.mxu0 %v3467_v7  ;;  %v3523_v7 = vcombine.high %v830_v2, %v834_v3  ;;  %v882_v59 = vld [vmem:[#allocation6 + $0x4b8] sm:$0xff] }
 0x279   :  { %2483 = vmatpush1.bf16.msra.mxu1 %v3464_v14  ;;  %v3520_v14 = vcombine.low %v829_v0, %v833_v1  ;;  %v885_v0 = vld [vmem:[#allocation6 + $0x4d0] sm:$0xff] }
 0x27a   :  { %2565 = vmatpush1.bf16.msra.mxu0 %v3466_v15  ;;  %2484 = vmatprep.subr.bf16.mxu1 %v3473_v17  ;;  %v3522_v15 = vcombine.low %v830_v2, %v834_v3  ;;  %v3529_v17 = vcombine.high %v837_v10, %v841_v11  ;;  %v889_v1 = vld [vmem:[#allocation6 + $0x4f0] sm:$0xff]  ;;  %v886_v2 = vld [vmem:[#allocation6 + $0x4d8] sm:$0xff] }
 0x27b   :  { %2566 = vmatprep.subr.bf16.mxu0 %v3475_v18  ;;  %v3531_v18 = vcombine.high %v838_v12, %v842_v13  ;;  %v890_v3 = vld [vmem:[#allocation6 + $0x4f8] sm:$0xff] }
 0x27d   :  { %2485 = vmatpush1.bf16.msra.mxu1 %v3472_v22  ;;  %v3528_v22 = vcombine.low %v837_v10, %v841_v11  ;;  %v897_v10 = vld [vmem:[#allocation6 + $0x530] sm:$0xff]  ;;  %v894_v11 = vld [vmem:[#allocation6 + $0x518] sm:$0xff] }
 0x27e   :  { %2567 = vmatpush1.bf16.msra.mxu0 %v3474_v23  ;;  %2486 = vmatprep.subr.bf16.mxu1 %v3481_v24  ;;  %v3530_v23 = vcombine.low %v838_v12, %v842_v13  ;;  %v3537_v24 = vcombine.high %v845_v49, %v849_v19  ;;  %v898_v12 = vld [vmem:[#allocation6 + $0x538] sm:$0xff]  ;;  %v3578_v13 = vcombine.low %v886_v2, %v890_v3 }
 0x27f   :  { %2568 = vmatprep.subr.bf16.mxu0 %v3483_v25  ;;  %v3539_v25 = vcombine.high %v846_v20, %v850_v21 }
 0x281   :  { %2487 = vmatpush1.bf16.msra.mxu1 %v3480_v32  ;;  %v3536_v32 = vcombine.low %v845_v49, %v849_v19  ;;  %v902_v49 = vld [vmem:[#allocation6 + $0x558] sm:$0xff] }
 0x282   :  { %2569 = vmatpush1.bf16.msra.mxu0 %v3482_v34  ;;  %2488 = vmatprep.subr.bf16.mxu1 %v3489_v35  ;;  %v3538_v34 = vcombine.low %v846_v20, %v850_v21  ;;  %v3545_v35 = vcombine.high %v853_v26, %v857_v29  ;;  %v906_v19 = vld [vmem:[#allocation6 + $0x578] sm:$0xff]  ;;  %v3586_v21 = vcombine.low %v894_v11, %v898_v12 }
 0x283   :  { %2570 = vmatprep.subr.bf16.mxu0 %v3491_v36  ;;  %v3547_v36 = vcombine.high %v854_v55, %v858_v31 }
 0x285   :  { %2489 = vmatpush1.bf16.msra.mxu1 %v3488_v41  ;;  %v3544_v41 = vcombine.low %v853_v26, %v857_v29  ;;  %v910_v26 = vld [vmem:[#allocation6 + $0x598] sm:$0xff] }
 0x286   :  { %2571 = vmatpush1.bf16.msra.mxu0 %v3490_v42  ;;  %2490 = vmatprep.subr.bf16.mxu1 %v3497_v43  ;;  %v3546_v42 = vcombine.low %v854_v55, %v858_v31  ;;  %v3553_v43 = vcombine.high %v861_v37, %v865_v38  ;;  %v914_v29 = vld [vmem:[#allocation6 + $0x5b8] sm:$0xff]  ;;  %v3594_v31 = vcombine.low %v902_v49, %v906_v19 }
 0x287   :  { %2572 = vmatprep.subr.bf16.mxu0 %v3499_v44  ;;  %v3555_v44 = vcombine.high %v862_v39, %v866_v40  ;;  %v918_v37 = vld [vmem:[#allocation6 + $0x5d8] sm:$0xff] }
 0x288   :  { %v922_v38 = vld [vmem:[#allocation6 + $0x5f8] sm:$0xff] }
 0x289   :  { %2491 = vmatpush1.bf16.msra.mxu1 %v3496_v51  ;;  %v874_v51 = vld [vmem:[#allocation6 + $0x478] sm:$0xff] }
 0x28a   :  { %2573 = vmatpush1.bf16.msra.mxu0 %v3498_v52  ;;  %2492 = vmatprep.subr.bf16.mxu1 %v3505_v53  ;;  %v3554_v52 = vcombine.low %v862_v39, %v866_v40  ;;  %v3561_v53 = vcombine.high %v869_v45, %v873_v46  ;;  %v3563_v57 = vcombine.high %v870_v48, %v874_v51 }
 0x28b   :  { %2574 = vmatprep.subr.bf16.mxu0 %v3507_v54  ;;  %v877_v54 = vld [vmem:[#allocation6 + $0x490] sm:$0xff]  ;;  %v3602_v40 = vcombine.low %v910_v26, %v914_v29 }
 0x28d   :  { %2493 = vmatpush1.bf16.msra.mxu1 %v3504_v60  ;;  %v3560_v60 = vcombine.low %v869_v45, %v873_v46  ;;  %v926_v45 = vld [vmem:[#allocation6 + $0x618] sm:$0xff] }
 0x28e   :  { %2575 = vmatpush1.bf16.msra.mxu0 %v3506_v61  ;;  %2494 = vmatprep.subr.bf16.mxu1 %v3513_v62  ;;  %v3562_v61 = vcombine.low %v870_v48, %v874_v51  ;;  %v3569_v62 = vcombine.high %v877_v54, %v881_v56  ;;  %v930_v46 = vld [vmem:[#allocation6 + $0x638] sm:$0xff]  ;;  %v3610_v48 = vcombine.low %v918_v37, %v922_v38 }
 0x28f   :  { %2576 = vmatprep.subr.bf16.mxu0 %v3515_v63  ;;  %v3571_v63 = vcombine.high %v878_v8, %v882_v59 }
 0x291   :  { %2495 = vmatpush1.bf16.msra.mxu1 %v3512_v4  ;;  %v3568_v4 = vcombine.low %v877_v54, %v881_v56  ;;  %v937_v54 = vld [vmem:[#allocation6 + $0x670] sm:$0xff]  ;;  %v934_v56 = vld [vmem:[#allocation6 + $0x658] sm:$0xff] }
 0x292   :  { %2577 = vmatpush1.bf16.msra.mxu0 %v3514_v5  ;;  %2496 = vmatprep.subr.bf16.mxu1 %v3521_v6  ;;  %v3577_v5 = vcombine.high %v885_v0, %v889_v1  ;;  %v3579_v6 = vcombine.high %v886_v2, %v890_v3 }
 0x293   :  { %2578 = vmatprep.subr.bf16.mxu0 %v3523_v7  ;;  %v893_v7 = vld [vmem:[#allocation6 + $0x510] sm:$0xff] }
 0x294   :  { %v3584_v20 = vcombine.low %v893_v7, %v897_v10 }
 0x295   :  { %2497 = vmatpush1.bf16.msra.mxu1 %v3520_v14  ;;  %v3585_v14 = vcombine.high %v893_v7, %v897_v10  ;;  %v950_v7 = vld [vmem:[#allocation6 + $0x6d8] sm:$0xff] }
 0x296   :  { %2579 = vmatpush1.bf16.msra.mxu0 %v3522_v15  ;;  %2498 = vmatprep.subr.bf16.mxu1 %v3529_v17  ;;  %v3587_v15 = vcombine.high %v894_v11, %v898_v12  ;;  %v901_v17 = vld [vmem:[#allocation6 + $0x550] sm:$0xff]  ;;  %v954_v10 = vld [vmem:[#allocation6 + $0x6f8] sm:$0xff] }
 0x297   :  { %2580 = vmatprep.subr.bf16.mxu0 %v3531_v18  ;;  %v905_v18 = vld [vmem:[#allocation6 + $0x570] sm:$0xff] }
 0x298   :  { %v3592_v55 = vcombine.low %v901_v17, %v905_v18 }
 0x299   :  { %2499 = vmatpush1.bf16.msra.mxu1 %v3528_v22  ;;  %v3593_v22 = vcombine.high %v901_v17, %v905_v18  ;;  %v958_v17 = vld [vmem:[#allocation6 + $0x718] sm:$0xff] }
 0x29a   :  { %2581 = vmatpush1.bf16.msra.mxu0 %v3530_v23  ;;  %2500 = vmatprep.subr.bf16.mxu1 %v3537_v24  ;;  %v3595_v23 = vcombine.high %v902_v49, %v906_v19  ;;  %v909_v24 = vld [vmem:[#allocation6 + $0x590] sm:$0xff]  ;;  %v962_v18 = vld [vmem:[#allocation6 + $0x738] sm:$0xff]  ;;  %v3642_v19 = vcombine.low %v950_v7, %v954_v10 }
 0x29b   :  { %2582 = vmatprep.subr.bf16.mxu0 %v3539_v25  ;;  %v913_v25 = vld [vmem:[#allocation6 + $0x5b0] sm:$0xff] }
 0x29c   :  { %v3600_v39 = vcombine.low %v909_v24, %v913_v25 }
 0x29d   :  { %2501 = vmatpush1.bf16.msra.mxu1 %v3536_v32  ;;  %v3601_v32 = vcombine.high %v909_v24, %v913_v25  ;;  %v966_v24 = vld [vmem:[#allocation6 + $0x758] sm:$0xff] }
 0x29e   :  { %2583 = vmatpush1.bf16.msra.mxu0 %v3538_v34  ;;  %2502 = vmatprep.subr.bf16.mxu1 %v3545_v35  ;;  %v3603_v34 = vcombine.high %v910_v26, %v914_v29  ;;  %v917_v35 = vld [vmem:[#allocation6 + $0x5d0] sm:$0xff]  ;;  %v970_v25 = vld [vmem:[#allocation6 + $0x778] sm:$0xff]  ;;  %v3650_v29 = vcombine.low %v958_v17, %v962_v18 }
 0x29f   :  { %2584 = vmatprep.subr.bf16.mxu0 %v3547_v36  ;;  %v921_v36 = vld [vmem:[#allocation6 + $0x5f0] sm:$0xff] }
 0x2a1   :  { %2503 = vmatpush1.bf16.msra.mxu1 %v3544_v41  ;;  %v3609_v41 = vcombine.high %v917_v35, %v921_v36 }
 0x2a2   :  { %2585 = vmatpush1.bf16.msra.mxu0 %v3546_v42  ;;  %2513 = vmatprep.subr.bf16.mxu1 %v3553_v43  ;;  %v3611_v42 = vcombine.high %v918_v37, %v922_v38  ;;  %v925_v43 = vld [vmem:[#allocation6 + $0x610] sm:$0xff]  ;;  %v3658_v38 = vcombine.low %v966_v24, %v970_v25 }
 0x2a3   :  { %2595 = vmatprep.subr.bf16.mxu0 %v3555_v44  ;;  %v929_v44 = vld [vmem:[#allocation6 + $0x630] sm:$0xff] }
 0x2a4   :  { %2505 = vmatmul.mubr.bf16.vlgmr.msra.gmra.mrb[8].mxu1 %v4275_v9  ;;  %v3617_v51 = vcombine.high %v925_v43, %v929_v44 }
 0x2a5   :  { %2587 = vmatmul.mubr.bf16.vlgmr.msra.gmra.mrb[12].mxu0 %v4275_v9  ;;  %2514 = vmatpush1.bf16.msra.mxu1 %v3552_v47  ;;  %v3570_v9 = vcombine.low %v878_v8, %v882_v59  ;;  %v3608_v47 = vcombine.low %v917_v35, %v921_v36  ;;  %v3616_v8 = vcombine.low %v925_v43, %v929_v44  ;;  %v974_v35 = vld [vmem:[#allocation6 + $0x798] sm:$0xff] }
 0x2a6   :  { %2545 = vmatprep.mubr.bf16.mxu1 %v4279_v16  ;;  %2596 = vmatpush1.bf16.msra.mxu0 %v3554_v52  ;;  %v3619_v52 = vcombine.high %v926_v45, %v930_v46  ;;  %v3618_v59 = vcombine.low %v926_v45, %v930_v46  ;;  %v978_v36 = vld [vmem:[#allocation6 + $0x7b8] sm:$0xff] }
 0x2a7   :  { %2627 = vmatprep.mubr.bf16.mxu0 %v4279_v16  ;;  %2515 = vmatprep.subr.bf16.mxu1 %v3561_v53  ;;  %v3576_v16 = vcombine.low %v885_v0, %v889_v1  ;;  %v933_v53 = vld [vmem:[#allocation6 + $0x650] sm:$0xff]  ;;  %v942_v0 = vld [vmem:[#allocation6 + $0x698] sm:$0xff]  ;;  %v3666_v46 = vcombine.low %v974_v35, %v978_v36 }
 0x2a8   :  { %2597 = vmatprep.subr.bf16.mxu0 %v3563_v57  ;;  %v938_v57 = vld [vmem:[#allocation6 + $0x678] sm:$0xff]  ;;  %v3624_v2 = vcombine.low %v933_v53, %v937_v54 }
 0x2a9   :  { %2516 = vmatpush1.bf16.msra.mxu1 %v3560_v60  ;;  %v3625_v60 = vcombine.high %v933_v53, %v937_v54  ;;  %v946_v1 = vld [vmem:[#allocation6 + $0x6b8] sm:$0xff]  ;;  %v3626_v3 = vcombine.low %v934_v56, %v938_v57  ;;  %v3986_v53 = vld [vmem:[#allocation7 + $0x40] sm:$0xff]  }
 0x2aa   :  { %2598 = vmatpush1.bf16.msra.mxu0 %v3562_v61  ;;  %2517 = vmatprep.subr.bf16.mxu1 %v3569_v62  ;;  %v3627_v61 = vcombine.high %v934_v56, %v938_v57  ;;  %v941_v62 = vld [vmem:[#allocation6 + $0x690] sm:$0xff]  ;;  %v3634_v12 = vcombine.low %v942_v0, %v946_v1  ;;  %v982_v43 = vld [vmem:[#allocation6 + $0x7d8] sm:$0xff]  ;;  %v3987_v54 = vld [vmem:[#allocation7 + $0xc0] sm:$0xff]  }
 0x2ab   :  { %2599 = vmatprep.subr.bf16.mxu0 %v3571_v63  ;;  %v945_v63 = vld [vmem:[#allocation6 + $0x6b0] sm:$0xff]  ;;  %v986_v44 = vld [vmem:[#allocation6 + $0x7f8] sm:$0xff]  ;;  %v3988_v56 = vld [vmem:[#allocation7] sm:$0xff]  }
 0x2ac   :  { %v3632_v11 = vcombine.low %v941_v62, %v945_v63  ;;  %v3989_v57 = vld [vmem:[#allocation7 + $0x80] sm:$0xff]  }
 0x2ad   :  { %2518 = vmatpush1.bf16.msra.mxu1 %v3568_v4  ;;  %v3633_v4 = vcombine.high %v941_v62, %v945_v63  ;;  %v3994_v62 = vld [vmem:[#allocation7 + $0x50] sm:$0xff]  }
 0x2ae   :  { %2600 = vmatpush1.bf16.msra.mxu0 %v3570_v9  ;;  %2519 = vmatprep.subr.bf16.mxu1 %v3577_v5  ;;  %v3635_v9 = vcombine.high %v942_v0, %v946_v1  ;;  %v949_v5 = vld [vmem:[#allocation6 + $0x6d0] sm:$0xff] }
 0x2af   :  { %2601 = vmatprep.subr.bf16.mxu0 %v3579_v6  ;;  %v953_v6 = vld [vmem:[#allocation6 + $0x6f0] sm:$0xff] }
 0x2b0   :  { %v3640_v49 = vcombine.low %v949_v5, %v953_v6  ;;  %v3995_v63 = vld [vmem:[#allocation7 + $0xd0] sm:$0xff]  }
 0x2b1   :  { %2520 = vmatpush1.bf16.msra.mxu1 %v3576_v16  ;;  %v3641_v16 = vcombine.high %v949_v5, %v953_v6  ;;  %v3996_v0 = vld [vmem:[#allocation7 + $0x10] sm:$0xff]   ;;  %v4003_v5 = vld [vmem:[#allocation7 + $0xe0] sm:$0xff]  }
 0x2b2   :  { %2602 = vmatpush1.bf16.msra.mxu0 %v3578_v13  ;;  %2521 = vmatprep.subr.bf16.mxu1 %v3585_v14  ;;  %v3643_v13 = vcombine.high %v950_v7, %v954_v10  ;;  %v957_v14 = vld [vmem:[#allocation6 + $0x710] sm:$0xff]  ;;  %v4004_v6 = vld [vmem:[#allocation7 + $0x20] sm:$0xff]   ;;  %v4006_v10 = vld [vmem:[#allocation7 + $0x68] sm:$0xff]  }
 0x2b3   :  { %2603 = vmatprep.subr.bf16.mxu0 %v3587_v15  ;;  %v961_v15 = vld [vmem:[#allocation6 + $0x730] sm:$0xff]  ;;  %v4005_v7 = vld [vmem:[#allocation7 + $0xa0] sm:$0xff]  }
 0x2b4   :  { %v3648_v26 = vcombine.low %v957_v14, %v961_v15  ;;  %v3997_v1 = vld [vmem:[#allocation7 + $0x90] sm:$0xff]  }
 0x2b5   :  { %2522 = vmatpush1.bf16.msra.mxu1 %v3584_v20  ;;  %v3649_v20 = vcombine.high %v957_v14, %v961_v15  ;;  %v4011_v14 = vld [vmem:[#allocation7 + $0xf0] sm:$0xff]  }
 0x2b6   :  { %2604 = vmatpush1.bf16.msra.mxu0 %v3586_v21  ;;  %2523 = vmatprep.subr.bf16.mxu1 %v3593_v22  ;;  %v3651_v21 = vcombine.high %v958_v17, %v962_v18  ;;  %v965_v22 = vld [vmem:[#allocation6 + $0x750] sm:$0xff]  ;;  %v4014_v18 = vld [vmem:[#allocation7 + $0x78] sm:$0xff]  }
 0x2b7   :  { %2605 = vmatprep.subr.bf16.mxu0 %v3595_v23  ;;  %v969_v23 = vld [vmem:[#allocation6 + $0x770] sm:$0xff] }
 0x2b8   :  { %v3656_v37 = vcombine.low %v965_v22, %v969_v23  ;;  %v4012_v15 = vld [vmem:[#allocation7 + $0x30] sm:$0xff]  }
 0x2b9   :  { %2524 = vmatpush1.bf16.msra.mxu1 %v3592_v55  ;;  %v3657_v55 = vcombine.high %v965_v22, %v969_v23  ;;  %v4013_v17 = vld [vmem:[#allocation7 + $0xb0] sm:$0xff]   ;;  %v4019_v22 = vld [vmem:[#allocation7 + $0x1c0] sm:$0xff]  }
 0x2ba   :  { %2606 = vmatpush1.bf16.msra.mxu0 %v3594_v31  ;;  %2525 = vmatprep.subr.bf16.mxu1 %v3601_v32  ;;  %v3659_v31 = vcombine.high %v966_v24, %v970_v25  ;;  %v973_v32 = vld [vmem:[#allocation6 + $0x790] sm:$0xff] }
 0x2bb   :  { %2607 = vmatprep.subr.bf16.mxu0 %v3603_v34  ;;  %v977_v34 = vld [vmem:[#allocation6 + $0x7b0] sm:$0xff] }
 0x2bc   :  { %v3664_v45 = vcombine.low %v973_v32, %v977_v34  ;;  %v4305_v23 = vld [vmem:[%s4336_s5 + $0x6] sm:$0xff] }
 0x2bd   :  { %2526 = vmatpush1.bf16.msra.mxu1 %v3600_v39  ;;  %v3665_v39 = vcombine.high %v973_v32, %v977_v34  ;;  %v991_v24 = vrot.slane %v4305_v23, %v4248_v28  ;;  %v999_v25 = vrot.slane %v4305_v23, %v311_v58 }
 0x2be   :  { %2608 = vmatpush1.bf16.msra.mxu0 %v3602_v40  ;;  %2527 = vmatprep.subr.bf16.mxu1 %v3609_v41  ;;  %v3667_v40 = vcombine.high %v974_v35, %v978_v36  ;;  %v981_v41 = vld [vmem:[#allocation6 + $0x7d0] sm:$0xff] }
 0x2bf   :  { %2609 = vmatprep.subr.bf16.mxu0 %v3611_v42  ;;  %v985_v42 = vld [vmem:[#allocation6 + $0x7f0] sm:$0xff] }
 0x2c1   :  { %2528 = vmatpush1.bf16.msra.mxu1 %v3608_v47  ;;  %v3673_v47 = vcombine.high %v981_v41, %v985_v42 }
 0x2c2   :  { %2610 = vmatpush1.bf16.msra.mxu0 %v3610_v48  ;;  %2529 = vmatprep.subr.bf16.mxu1 %v3617_v51  ;;  %v3675_v48 = vcombine.high %v982_v43, %v986_v44  ;;  %v3672_v51 = vcombine.low %v981_v41, %v985_v42 }
 0x2c3   :  { %2611 = vmatprep.subr.bf16.mxu0 %v3619_v52  ;;  %v3674_v52 = vcombine.low %v982_v43, %v986_v44 }
 0x2c5   :  { %2530 = vmatpush1.bf16.msra.mxu1 %v3616_v8  ;;  %v3990_v8 = vld [vmem:[#allocation7 + $0x48] sm:$0xff]  }
 0x2c6   :  { %2612 = vmatpush1.bf16.msra.mxu0 %v3618_v59  ;;  %2531 = vmatprep.subr.bf16.mxu1 %v3625_v60  ;;  %v3991_v59 = vld [vmem:[#allocation7 + $0xc8] sm:$0xff]  }
 0x2c7   :  { %2613 = vmatprep.subr.bf16.mxu0 %v3627_v61  ;;  %v3992_v60 = vld [vmem:[#allocation7 + $0x8] sm:$0xff]  }
 0x2c8   :  { %v3993_v61 = vld [vmem:[#allocation7 + $0x88] sm:$0xff]  }
 0x2c9   :  { %2532 = vmatpush1.bf16.msra.mxu1 %v3624_v2  ;;  %v3998_v2 = vld [vmem:[#allocation7 + $0x58] sm:$0xff]  }
 0x2ca   :  { %2614 = vmatpush1.bf16.msra.mxu0 %v3626_v3  ;;  %2533 = vmatprep.subr.bf16.mxu1 %v3633_v4  ;;  %v3999_v3 = vld [vmem:[#allocation7 + $0xd8] sm:$0xff]  }
 0x2cb   :  { %2615 = vmatprep.subr.bf16.mxu0 %v3635_v9  ;;  %v4000_v4 = vld [vmem:[#allocation7 + $0x18] sm:$0xff]   ;;  %v4002_v9 = vld [vmem:[#allocation7 + $0x60] sm:$0xff]  }
 0x2cd   :  { %2534 = vmatpush1.bf16.msra.mxu1 %v3632_v11  ;;  %v4007_v11 = vld [vmem:[#allocation7 + $0xe8] sm:$0xff]  }
 0x2ce   :  { %2616 = vmatpush1.bf16.msra.mxu0 %v3634_v12  ;;  %2535 = vmatprep.subr.bf16.mxu1 %v3641_v16  ;;  %v4008_v12 = vld [vmem:[#allocation7 + $0x28] sm:$0xff]  }
 0x2cf   :  { %2617 = vmatprep.subr.bf16.mxu0 %v3643_v13  ;;  %v4009_v16 = vld [vmem:[#allocation7 + $0xa8] sm:$0xff]   ;;  %v4010_v13 = vld [vmem:[#allocation7 + $0x70] sm:$0xff]  }
 0x2d1   :  { %2536 = vmatpush1.bf16.msra.mxu1 %v3640_v49  ;;  %v4015_v49 = vld [vmem:[#allocation7 + $0xf8] sm:$0xff]  }
 0x2d2   :  { %2618 = vmatpush1.bf16.msra.mxu0 %v3642_v19  ;;  %2537 = vmatprep.subr.bf16.mxu1 %v3649_v20  ;;  %v4016_v19 = vld [vmem:[#allocation7 + $0x38] sm:$0xff]  }
 0x2d3   :  { %2619 = vmatprep.subr.bf16.mxu0 %v3651_v21  ;;  %v4017_v20 = vld [vmem:[#allocation7 + $0xb8] sm:$0xff]   ;;  %v4018_v21 = vld [vmem:[#allocation7 + $0x140] sm:$0xff]  }
 0x2d5   :  { %2538 = vmatpush1.bf16.msra.mxu1 %v3648_v26  ;;  %v995_v26 = vrot.slane %v4305_v23, %v4254_v30 }
 0x2d6   :  { %2620 = vmatpush1.bf16.msra.mxu0 %v3650_v29  ;;  %2539 = vmatprep.subr.bf16.mxu1 %v3657_v55  ;;  %v1003_v29 = vrot.slane %v4305_v23, %v315_v50  ;;  %v4021_v50 = vld [vmem:[#allocation7 + $0x180] sm:$0xff]  }
 0x2d7   :  { %2621 = vmatprep.subr.bf16.mxu0 %v3659_v31 }
 0x2d9   :  { %2540 = vmatpush1.bf16.msra.mxu1 %v3656_v37 }
 0x2da   :  { %2622 = vmatpush1.bf16.msra.mxu0 %v3658_v38  ;;  %2541 = vmatprep.subr.bf16.mxu1 %v3665_v39 }
 0x2db   :  { %2623 = vmatprep.subr.bf16.mxu0 %v3667_v40 }
 0x2dd   :  { %2542 = vmatpush1.bf16.msra.mxu1 %v3664_v45 }
 0x2de   :  { %2624 = vmatpush1.bf16.msra.mxu0 %v3666_v46  ;;  %2543 = vmatprep.subr.bf16.mxu1 %v3673_v47  ;;  %v4020_v46 = vld [vmem:[#allocation7 + $0x100] sm:$0xff]  }
 0x2df   :  { %2625 = vmatprep.subr.bf16.mxu0 %v3675_v48 }
 0x2e1   :  { %2544 = vmatpush1.bf16.msra.mxu1 %v3672_v51  ;;  %v4022_v51 = vld [vmem:[#allocation7 + $0x148] sm:$0xff]  }
 0x2e2   :  { %2626 = vmatpush1.bf16.msra.mxu0 %v3674_v52  ;;  %3741 = vmatprep.subr.bf16.mxu1 %v3986_v53  ;;  %v4023_v52 = vld [vmem:[#allocation7 + $0x1c8] sm:$0xff]  }
 0x2e3   :  { %3763 = vmatprep.subr.bf16.mxu0 %v3987_v54  ;;  %v4024_v53 = vld [vmem:[#allocation7 + $0x108] sm:$0xff]  }
 0x2e4   :  { %2546 = vmatmul.mubr.bf16.vlgmr.msra.gmra.mrb[8].mxu1 %v4290_v33  ;;  %v4025_v54 = vld [vmem:[#allocation7 + $0x188] sm:$0xff]  }
 0x2e5   :  { %2628 = vmatmul.mubr.bf16.vlgmr.msra.gmra.mrb[12].mxu0 %v4290_v33  ;;  %3742 = vmatpush3.bf16.msra.mxu1 %v3988_v56  ;;  %v4001_v33 = vld [vmem:[#allocation7 + $0x98] sm:$0xff]   ;;  %v4026_v56 = vld [vmem:[#allocation7 + $0x150] sm:$0xff]  }
 0x2e6   :  { %3764 = vmatpush3.bf16.msra.mxu0 %v3989_v57  ;;  %3743 = vmatprep.subr.bf16.mxu1 %v3990_v8  ;;  %v4027_v57 = vld [vmem:[#allocation7 + $0x1d0] sm:$0xff]  }
 0x2e7   :  { %3765 = vmatprep.subr.bf16.mxu0 %v3991_v59  ;;  %v4028_v8 = vld [vmem:[#allocation7 + $0x110] sm:$0xff]  }
 0x2e8   :  { %v4029_v59 = vld [vmem:[#allocation7 + $0x190] sm:$0xff]  }
 0x2e9   :  { %3744 = vmatpush3.bf16.msra.mxu1 %v3992_v60  ;;  %v4030_v60 = vld [vmem:[#allocation7 + $0x158] sm:$0xff]  }
 0x2ea   :  { %3766 = vmatpush3.bf16.msra.mxu0 %v3993_v61  ;;  %3745 = vmatprep.subr.bf16.mxu1 %v3994_v62  ;;  %v4031_v61 = vld [vmem:[#allocation7 + $0x1d8] sm:$0xff]  }
 0x2eb   :  { %3767 = vmatprep.subr.bf16.mxu0 %v3995_v63  ;;  %v4032_v62 = vld [vmem:[#allocation7 + $0x118] sm:$0xff]  }
 0x2ec   :  { %v4033_v63 = vld [vmem:[#allocation7 + $0x198] sm:$0xff]  }
 0x2ed   :  { %3746 = vmatpush3.bf16.msra.mxu1 %v3996_v0  ;;  %v4034_v0 = vld [vmem:[#allocation7 + $0x160] sm:$0xff]  }
 0x2ee   :  { %3768 = vmatpush3.bf16.msra.mxu0 %v3997_v1  ;;  %3747 = vmatprep.subr.bf16.mxu1 %v3998_v2  ;;  %v4035_v1 = vld [vmem:[#allocation7 + $0x1e0] sm:$0xff]  }
 0x2ef   :  { %3769 = vmatprep.subr.bf16.mxu0 %v3999_v3  ;;  %v4036_v2 = vld [vmem:[#allocation7 + $0x120] sm:$0xff]  }
 0x2f0   :  { %v4037_v3 = vld [vmem:[#allocation7 + $0x1a0] sm:$0xff]  }
 0x2f1   :  { %3748 = vmatpush3.bf16.msra.mxu1 %v4000_v4  ;;  %v4038_v4 = vld [vmem:[#allocation7 + $0x168] sm:$0xff]  }
 0x2f2   :  { %3770 = vmatpush3.bf16.msra.mxu0 %v4001_v33  ;;  %3749 = vmatprep.subr.bf16.mxu1 %v4002_v9  ;;  %v4039_v33 = vld [vmem:[#allocation7 + $0x1e8] sm:$0xff]  }
 0x2f3   :  { %3771 = vmatprep.subr.bf16.mxu0 %v4003_v5  ;;  %v4040_v9 = vld [vmem:[#allocation7 + $0x128] sm:$0xff]  }
 0x2f4   :  { %v4041_v5 = vld [vmem:[#allocation7 + $0x1a8] sm:$0xff]  }
 0x2f5   :  { %3750 = vmatpush3.bf16.msra.mxu1 %v4004_v6  ;;  %v4042_v6 = vld [vmem:[#allocation7 + $0x170] sm:$0xff]  }
 0x2f6   :  { %3772 = vmatpush3.bf16.msra.mxu0 %v4005_v7  ;;  %3751 = vmatprep.subr.bf16.mxu1 %v4006_v10  ;;  %v4043_v7 = vld [vmem:[#allocation7 + $0x1f0] sm:$0xff]  }
 0x2f7   :  { %3773 = vmatprep.subr.bf16.mxu0 %v4007_v11  ;;  %v4044_v10 = vld [vmem:[#allocation7 + $0x130] sm:$0xff]  }
 0x2f8   :  { %v4045_v11 = vld [vmem:[#allocation7 + $0x1b0] sm:$0xff]  }
 0x2f9   :  { %3752 = vmatpush3.bf16.msra.mxu1 %v4008_v12  ;;  %v4046_v12 = vld [vmem:[#allocation7 + $0x178] sm:$0xff]  }
 0x2fa   :  { %3774 = vmatpush3.bf16.msra.mxu0 %v4009_v16  ;;  %3753 = vmatprep.subr.bf16.mxu1 %v4010_v13  ;;  %v4047_v16 = vld [vmem:[#allocation7 + $0x1f8] sm:$0xff]  }
 0x2fb   :  { %3775 = vmatprep.subr.bf16.mxu0 %v4011_v14  ;;  %v4048_v13 = vld [vmem:[#allocation7 + $0x138] sm:$0xff]  }
 0x2fc   :  { %v4049_v14 = vld [vmem:[#allocation7 + $0x1b8] sm:$0xff]  }
 0x2fd   :  { %3754 = vmatpush3.bf16.msra.mxu1 %v4012_v15  ;;  %v1006_v15 = vsub.s32 4, %v4245_v27 }
 0x2fe   :  { %3776 = vmatpush3.bf16.msra.mxu0 %v4013_v17  ;;  %3755 = vmatprep.subr.bf16.mxu1 %v4014_v18  ;;  %v1014_v17 = vsub.s32 6, %v4245_v27  ;;  %v1010_v18 = vsub.s32 5, %v4245_v27 }
 0x2ff   :  { %3777 = vmatprep.subr.bf16.mxu0 %v4015_v49  ;;  %v1018_v49 = vsub.s32 7, %v4245_v27 }
 0x301   :  { %3756 = vmatpush3.bf16.msra.mxu1 %v4016_v19  ;;  %v1007_v19 = vrot.slane %v4305_v23, %v1006_v15 }
 0x302   :  { %3778 = vmatpush3.bf16.msra.mxu0 %v4017_v20  ;;  %3785 = vmatprep.subr.bf16.mxu1 %v4018_v21  ;;  %v1015_v20 = vrot.slane %v4305_v23, %v1014_v17  ;;  %v1011_v21 = vrot.slane %v4305_v23, %v1010_v18 }
 0x303   :  { %3807 = vmatprep.subr.bf16.mxu0 %v4019_v22  ;;  %v1019_v22 = vrot.slane %v4305_v23, %v1018_v49 }
 0x337   :  { %v2383_v55 = vpop.f32.mrb[4].mxu1  ;;  %v2465_v31 = vpop.f32.mrb[8].mxu0 }
 0x338   :  { %v3829_v32 = vadd.f32 %v2383_v55, %v991_v24  ;;  %v3831_v34 = vadd.f32 %v2465_v31, %v999_v25  ;;  %v2385_v35 = vpop.f32.mrb[5].mxu1  ;;  %v2467_v36 = vpop.f32.mrb[9].mxu0 }
 0x339   :  { %v3830_v37 = vadd.f32 %v2385_v35, %v995_v26  ;;  %v3832_v38 = vadd.f32 %v2467_v36, %v1003_v29  ;;  %v2387_v28 = vpop.f32.mrb[6].mxu1  ;;  %v2469_v39 = vpop.f32.mrb[10].mxu0 }
 0x33a   :  { %v2636_v40 = vmax.f32 %v3829_v32, 0.0  ;;  %v2638_v41 = vmax.f32 %v3831_v34, 0.0  ;;  %v2388_v58 = vpop.f32.mrb[7].mxu1  ;;  %v2470_v42 = vpop.f32.mrb[11].mxu0 }
 0x33b   :  { %v2637_v43 = vmax.f32 %v3830_v37, 0.0  ;;  %v2639_v30 = vmax.f32 %v3832_v38, 0.0 }
 0x33c   :  { %v2644_v47 = vpack.c.bf16 %v2636_v40, %v2636_v40  ;;  %v2646_v48 = vpack.c.bf16 %v2638_v41, %v2638_v41 }
 0x33d   :  { %v2645_v44 = vpack.c.bf16 %v2637_v43, %v2637_v43  ;;  %v2647_v45 = vpack.c.bf16 %v2639_v30, %v2639_v30 }
 0x33f   :  { %3202 = vmatprep.mubr.bf16.mxu1 %v2645_v44  ;;  %3242 = vmatprep.mubr.bf16.mxu0 %v2647_v45  ;;  %v3676_v44 = vld [vmem:[%s4336_s5 + $0xe] ss:$0 sm:$0xff] }
 0x340   :  { %3203 = vmatmul.mubr.bf16.vlgmr.msra.gmra.mrb[12].mxu1 %v2644_v47  ;;  %3243 = vmatmul.mubr.bf16.vlgmr.msra.gmra.mrb[16].mxu0 %v2646_v48 }
 0x341   :  { %3786 = vmatpush3.bf16.msra.mxu1 %v4020_v46  ;;  %3808 = vmatpush3.bf16.msra.mxu0 %v4021_v50 }
 0x342   :  { %3787 = vmatprep.subr.bf16.mxu1 %v4022_v51  ;;  %3809 = vmatprep.subr.bf16.mxu0 %v4023_v52 }
 0x345   :  { %3788 = vmatpush3.bf16.msra.mxu1 %v4024_v53  ;;  %3810 = vmatpush3.bf16.msra.mxu0 %v4025_v54 }
 0x346   :  { %3789 = vmatprep.subr.bf16.mxu1 %v4026_v56  ;;  %3811 = vmatprep.subr.bf16.mxu0 %v4027_v57 }
 0x349   :  { %3790 = vmatpush3.bf16.msra.mxu1 %v4028_v8  ;;  %3812 = vmatpush3.bf16.msra.mxu0 %v4029_v59 }
 0x34a   :  { %3791 = vmatprep.subr.bf16.mxu1 %v4030_v60  ;;  %3813 = vmatprep.subr.bf16.mxu0 %v4031_v61 }
 0x34d   :  { %3792 = vmatpush3.bf16.msra.mxu1 %v4032_v62  ;;  %3814 = vmatpush3.bf16.msra.mxu0 %v4033_v63 }
 0x34e   :  { %3793 = vmatprep.subr.bf16.mxu1 %v4034_v0  ;;  %3815 = vmatprep.subr.bf16.mxu0 %v4035_v1 }
 0x351   :  { %3794 = vmatpush3.bf16.msra.mxu1 %v4036_v2  ;;  %3816 = vmatpush3.bf16.msra.mxu0 %v4037_v3 }
 0x352   :  { %3795 = vmatprep.subr.bf16.mxu1 %v4038_v4  ;;  %3817 = vmatprep.subr.bf16.mxu0 %v4039_v33 }
 0x355   :  { %3796 = vmatpush3.bf16.msra.mxu1 %v4040_v9  ;;  %3818 = vmatpush3.bf16.msra.mxu0 %v4041_v5 }
 0x356   :  { %3797 = vmatprep.subr.bf16.mxu1 %v4042_v6  ;;  %3819 = vmatprep.subr.bf16.mxu0 %v4043_v7 }
 0x359   :  { %3798 = vmatpush3.bf16.msra.mxu1 %v4044_v10  ;;  %3820 = vmatpush3.bf16.msra.mxu0 %v4045_v11 }
 0x35a   :  { %3799 = vmatprep.subr.bf16.mxu1 %v4046_v12  ;;  %3821 = vmatprep.subr.bf16.mxu0 %v4047_v16 }
 0x35d   :  { %3800 = vmatpush3.bf16.msra.mxu1 %v4048_v13  ;;  %3822 = vmatpush3.bf16.msra.mxu0 %v4049_v14 }
 0x3b7   :  { %v2547_v24 = vpop.f32.mrb[8].mxu1 }
 0x3b8   :  { %v3833_v25 = vadd.f32 %v2547_v24, %v1007_v19  ;;  %v2629_v26 = vpop.f32.mrb[12].mxu0  ;;  %v2549_v29 = vpop.f32.mrb[9].mxu1 }
 0x3b9   :  { %v3835_v55 = vadd.f32 %v2629_v26, %v1015_v20  ;;  %v3834_v31 = vadd.f32 %v2549_v29, %v1011_v21  ;;  %v2631_v32 = vpop.f32.mrb[13].mxu0  ;;  %v2551_v34 = vpop.f32.mrb[10].mxu1 }
 0x3ba   :  { %v2640_v35 = vmax.f32 %v3833_v25, 0.0  ;;  %v3836_v36 = vadd.f32 %v2631_v32, %v1019_v22  ;;  %v2633_v37 = vpop.f32.mrb[14].mxu0  ;;  %v2552_v27 = vpop.f32.mrb[11].mxu1 }
 0x3bb   :  { %v2642_v38 = vmax.f32 %v3835_v55, 0.0  ;;  %v2641_v28 = vmax.f32 %v3834_v31, 0.0  ;;  %v2634_v39 = vpop.f32.mrb[15].mxu0 }
 0x3bc   :  { %v2643_v40 = vmax.f32 %v3836_v36, 0.0  ;;  %v2648_v58 = vpack.c.bf16 %v2640_v35, %v2640_v35 }
 0x3bd   :  { %v2649_v41 = vpack.c.bf16 %v2641_v28, %v2641_v28  ;;  %v2650_v23 = vpack.c.bf16 %v2642_v38, %v2642_v38 }
 0x3be   :  { %v2651_v42 = vpack.c.bf16 %v2643_v40, %v2643_v40 }
 0x3bf   :  { %3282 = vmatprep.mubr.bf16.mxu1 %v2649_v41 }
 0x3c0   :  { %3322 = vmatprep.mubr.bf16.mxu0 %v2651_v42  ;;  %3283 = vmatmul.mubr.bf16.vlgmr.msra.gmra.mrb[16].mxu1 %v2648_v58 }
 0x3c1   :  { %3323 = vmatmul.mubr.bf16.vlgmr.msra.gmra.mrb[20].mxu0 %v2650_v23 }
 0x413   :  { %v3757_v43 = vpop.f32.mrb[12].mxu1  ;;  %v3779_v30 = vpop.f32.mrb[16].mxu0 }
 0x414   :  { %v3758_v45 = vpop.f32.mrb[13].mxu1  ;;  %v3780_v46 = vpop.f32.mrb[17].mxu0 }
 0x415   :  { %v3759_v50 = vadd.f32 %v3758_v45, %v3757_v43  ;;  %v3781_v47 = vadd.f32 %v3780_v46, %v3779_v30  ;;  %v3760_v48 = vpop.f32.mrb[14].mxu1  ;;  %v3782_v51 = vpop.f32.mrb[18].mxu0 }
 0x416   :  { %v3761_v52 = vpop.f32.mrb[15].mxu1  ;;  %v3783_v53 = vpop.f32.mrb[19].mxu0 }
 0x417   :  { %v3205_v54 = vadd.f32 %v3759_v50, %v3676_v44 }
 0x419   :  { %v3245_v56 = vadd.f32 %v3781_v47, %v3205_v54 }
 0x493   :  { %v3801_v57 = vpop.f32.mrb[16].mxu1 }
 0x494   :  { %v3823_v8 = vpop.f32.mrb[20].mxu0  ;;  %v3802_v59 = vpop.f32.mrb[17].mxu1 }
 0x495   :  { %v3803_v60 = vadd.f32 %v3802_v59, %v3801_v57  ;;  %v3824_v61 = vpop.f32.mrb[21].mxu0  ;;  %v3804_v62 = vpop.f32.mrb[18].mxu1 }
 0x496   :  { %v3825_v63 = vadd.f32 %v3824_v61, %v3823_v8  ;;  %v3826_v0 = vpop.f32.mrb[22].mxu0  ;;  %v3805_v1 = vpop.f32.mrb[19].mxu1 }
 0x497   :  { %v3285_v2 = vadd.f32 %v3803_v60, %v3245_v56  ;;  %v3827_v3 = vpop.f32.mrb[23].mxu0 }
 0x499   :  { %v3325_v4 = vadd.f32 %v3825_v63, %v3285_v2 }
 0x49b   :  { %4050 = vtanh.f32 %v3325_v4 }
 0x4a5   :  { %v4051_v33 = vpop.eup %4050 }
 0x4a6   :  { %v3331_v9 = vpack.c.bf16 %v4051_v33, %v4051_v33 }
 0x4a8   :  { %3332 = vst [vmem:[%s4337_s6] sm:$0xf] %v3331_v9 }
 0x4a9   :  { %3337 = vsyncpa [#allocation3], 1 }
 0x4aa   :  { %3338 = vsyncpa [#allocation5], 1 }
 0x4ab   :  { %3339 = vsyncpa [#allocation8], 1 }

</bundles_post_ra>
